<compile_context>
chip_gen: v7x
topology: tpu7x:2x2x1
jax: 0.10.0
libtpu: 0.0.40
codegen_flags: <defaults>
</compile_context>

<pallas_src>
import functools

import jax
import jax.numpy as jnp
from jax import lax
from jax.experimental import pallas as pl
from jax.experimental.pallas import tpu as pltpu


def mobile_block_kernel(x_ref, wdw_ref, bdw_ref, wpw_ref, bpw_ref, o_ref, ymat_ref,
                        *, stride):
    """Fused depthwise(3x3)+BN+ReLU -> pointwise(1x1, stride)+BN+ReLU.

    x_ref:    (1, H+2, W+2, Cin)  spatially pre-padded NHWC input
    wdw_ref:  (9, Cin)            depthwise taps (k = kh*3+kw), BN scale folded in
    bdw_ref:  (1, Cin)            depthwise folded BN bias
    wpw_ref:  (Cout, Cin)         pointwise weights, BN scale folded in
    bpw_ref:  (Cout, 1)           pointwise folded BN bias
    o_ref:    (1, Cout, Ho*Wo)    output, channel-major, flat (lane-dense) spatial
    ymat_ref: (Ho*Wo, Cin)        VMEM scratch bridging the two stages
    """
    H = x_ref.shape[1] - 2
    W = x_ref.shape[2] - 2
    Cin = x_ref.shape[3]
    Ws = (W - 1) // stride + 1  # pointwise output width

    # ---- depthwise 3x3 (VPU): 9 shifted taps, per-channel weights live on lanes ----
    w_dw = wdw_ref[...]                                     # (9, Cin)
    acc = jnp.zeros((H, W, Cin), jnp.float32)
    for kh in range(3):
        for kw in range(3):
            xs = x_ref[0, kh:kh + H, kw:kw + W, :]          # (H, W, Cin)
            acc = acc + xs.astype(jnp.float32) * w_dw[kh * 3 + kw]
    y = jnp.maximum(acc + bdw_ref[0], 0.0)                  # folded BN bias + ReLU

    # ---- bridge DW -> PW: lay y out as a (Ho*Wo, Cin) matrix in VMEM scratch ----
    # Row-block stores avoid relying on an in-register (H,W,C)->(H*W,C) relayout.
    row_idx = 0
    for h in range(0, H, stride):
        row = y[h]                                          # (W, Cin)
        if stride != 1:
            # TODO(synk): stride>1 path uses strided value slicing; only stride=1 exercised here.
            row = row[::stride, :]                          # (Ws, Cin)
        ymat_ref[row_idx * Ws:(row_idx + 1) * Ws, :] = row
        row_idx += 1

    # ---- pointwise 1x1 (single MXU matmul, f32 accumulation) + folded BN bias + ReLU ----
    z = lax.dot_general(wpw_ref[...], ymat_ref[...],
                        dimension_numbers=(((1,), (1,)), ((), ())),
                        preferred_element_type=jnp.float32)  # (Cout, Ho*Wo)
    z = jnp.maximum(z + bpw_ref[...], 0.0)
    o_ref[0] = z.astype(o_ref.dtype)                         # lane-dense store (Ho*Wo mult. of 128 here)


@functools.partial(jax.jit, static_argnames=("stride", "eps"))
def mobile_block_forward(x, w_dw, g_dw, b_dw, m_dw, v_dw,
                         w_pw, g_pw, b_pw, m_pw, v_pw, *, stride=1, eps=1e-5):
    """x: (N, Cin, H, W) NCHW.  Per MobileBlock.Splitdata only x[0] is consumed, so the
    output is (1, Cout, Ho, Wo) regardless of N (matches the PyTorch module)."""
    N, Cin, H, W = x.shape
    Cout = w_pw.shape[0]
    Ho = (H - 1) // stride + 1
    Wo = (W - 1) // stride + 1
    M = Ho * Wo

    # ---- fold eval-mode BatchNorm into conv weights / biases (tiny, done once) ----
    s_dw = g_dw / jnp.sqrt(v_dw + eps)                                   # (Cin,)
    wdw = (w_dw * s_dw[:, None, None]).reshape(Cin, 9).T                 # (9, Cin)
    bdw = (b_dw - m_dw * s_dw).reshape(1, Cin)
    s_pw = g_pw / jnp.sqrt(v_pw + eps)                                   # (Cout,)
    wpw = w_pw.reshape(Cout, Cin) * s_pw[:, None]                        # (Cout, Cin)
    bpw = (b_pw - m_pw * s_pw).reshape(Cout, 1)

    # ---- single input-prep pass: NCHW -> NHWC + 3x3 halo pad (forced by the NCHW interface) ----
    x_nhwc = jnp.transpose(x[0:1], (0, 2, 3, 1))
    x_pad = jnp.pad(x_nhwc, ((0, 0), (1, 1), (1, 1), (0, 0)))

    out_flat = pl.pallas_call(
        functools.partial(mobile_block_kernel, stride=stride),
        out_shape=jax.ShapeDtypeStruct((1, Cout, M), x.dtype),
        grid_spec=pltpu.PrefetchScalarGridSpec(
            num_scalar_prefetch=0,
            grid=(1,),
            in_specs=[
                pl.BlockSpec((1, H + 2, W + 2, Cin), lambda n: (n, 0, 0, 0)),
                pl.BlockSpec((9, Cin), lambda n: (0, 0)),
                pl.BlockSpec((1, Cin), lambda n: (0, 0)),
                pl.BlockSpec((Cout, Cin), lambda n: (0, 0)),
                pl.BlockSpec((Cout, 1), lambda n: (0, 0)),
            ],
            out_specs=pl.BlockSpec((1, Cout, M), lambda n: (n, 0, 0)),
            scratch_shapes=[pltpu.VMEM((M, Cin), jnp.float32)],
        ),
        compiler_params=pltpu.CompilerParams(
            dimension_semantics=("parallel",)),
    )(x_pad,
      wdw.astype(jnp.float32), bdw.astype(jnp.float32),
      wpw.astype(jnp.float32), bpw.astype(jnp.float32))

    # free metadata reshape back to PyTorch NCHW layout
    return out_flat.reshape(1, Cout, Ho, Wo)


def reference_forward(x, w_dw, g_dw, b_dw, m_dw, v_dw,
                      w_pw, g_pw, b_pw, m_pw, v_pw, stride=1, eps=1e-5):
    """Pure-JAX/XLA reference with identical (eval-mode BN) semantics."""
    N, Cin, H, W = x.shape
    Cout = w_pw.shape[0]
    x0 = x[0:1]
    y = lax.conv_general_dilated(
        x0, w_dw.reshape(Cin, 1, 3, 3), window_strides=(1, 1),
        padding=((1, 1), (1, 1)),
        dimension_numbers=('NCHW', 'OIHW', 'NCHW'),
        feature_group_count=Cin)
    s_dw = (g_dw / jnp.sqrt(v_dw + eps)).reshape(1, Cin, 1, 1)
    y = jnp.maximum(y * s_dw + b_dw.reshape(1, Cin, 1, 1)
                    - m_dw.reshape(1, Cin, 1, 1) * s_dw, 0.0)
    z = lax.conv_general_dilated(
        y, w_pw.reshape(Cout, Cin, 1, 1), window_strides=(stride, stride),
        padding=((0, 0), (0, 0)),
        dimension_numbers=('NCHW', 'OIHW', 'NCHW'))
    s_pw = (g_pw / jnp.sqrt(v_pw + eps)).reshape(1, Cout, 1, 1)
    z = jnp.maximum(z * s_pw + b_pw.reshape(1, Cout, 1, 1)
                    - m_pw.reshape(1, Cout, 1, 1) * s_pw, 0.0)
    return z


if __name__ == "__main__":
    key = jax.random.PRNGKey(0)
    ks = jax.random.split(key, 11)
    Cin, Cout, H, W, stride = 4, 8, 16, 16, 1

    # MobileBlock only consumes x[0] (Splitdata), so batch>1 is accepted but ignored past index 0.
    x = jax.random.normal(ks[0], (2, Cin, H, W), dtype=jnp.float32)

    # Cin independent DepthWiseNet(1,1): conv weights (1,1,3,3) stacked -> (Cin,3,3); BN(1) params -> (Cin,)
    w_dw = 0.3 * jax.random.normal(ks[1], (Cin, 3, 3), dtype=jnp.float32)
    g_dw = 1.0 + 0.1 * jax.random.normal(ks[2], (Cin,), dtype=jnp.float32)
    b_dw = 0.1 * jax.random.normal(ks[3], (Cin,), dtype=jnp.float32)
    m_dw = 0.1 * jax.random.normal(ks[4], (Cin,), dtype=jnp.float32)
    v_dw = jnp.abs(1.0 + 0.1 * jax.random.normal(ks[5], (Cin,), dtype=jnp.float32))

    # PointWiseNet: conv weight (Cout,Cin,1,1); BN(Cout) params
    w_pw = 0.3 * jax.random.normal(ks[6], (Cout, Cin, 1, 1), dtype=jnp.float32)
    g_pw = 1.0 + 0.1 * jax.random.normal(ks[7], (Cout,), dtype=jnp.float32)
    b_pw = 0.1 * jax.random.normal(ks[8], (Cout,), dtype=jnp.float32)
    m_pw = 0.1 * jax.random.normal(ks[9], (Cout,), dtype=jnp.float32)
    v_pw = jnp.abs(1.0 + 0.1 * jax.random.normal(ks[10], (Cout,), dtype=jnp.float32))

    out = mobile_block_forward(x, w_dw, g_dw, b_dw, m_dw, v_dw,
                               w_pw, g_pw, b_pw, m_pw, v_pw, stride=stride)
    out = jax.block_until_ready(out)

    ref = reference_forward(x, w_dw, g_dw, b_dw, m_dw, v_dw,
                            w_pw, g_pw, b_pw, m_pw, v_pw, stride=stride)
    assert out.shape == (1, Cout, H, W), out.shape
    max_err = float(jnp.max(jnp.abs(out - ref)))
    assert jnp.allclose(out, ref, atol=2e-4, rtol=2e-4), max_err
    print("KERNEL_OK")
</pallas_src>

<mosaic_0001>
module attributes {stable_mosaic.version = 11 : i64} {
  func.func @mobile_block_kernel(%arg0: i32, %arg1: memref<1x18x18x4xf32, #tpu.memory_space<vmem>>, %arg2: memref<9x4xf32, #tpu.memory_space<vmem>>, %arg3: memref<1x4xf32, #tpu.memory_space<vmem>>, %arg4: memref<8x4xf32, #tpu.memory_space<vmem>>, %arg5: memref<8x1xf32, #tpu.memory_space<vmem>>, %arg6: memref<1x8x256xf32, #tpu.memory_space<vmem>>, %arg7: memref<256x4xf32, #tpu.memory_space<vmem>>) attributes {dimension_semantics = [#tpu.dimension_semantics<parallel>], iteration_bounds = array<i64: 1>, scalar_prefetch = 0 : i64, scratch_operands = 1 : i64, tpu.core_type = #tpu.core_type<tc>, window_params = [{transform_indices = @transform_0, window_bounds = array<i64: 1, 18, 18, 4>}, {pipeline_mode = #tpu.pipeline_mode<synchronous>, transform_indices = @transform_1, window_bounds = array<i64: 9, 4>}, {pipeline_mode = #tpu.pipeline_mode<synchronous>, transform_indices = @transform_2, window_bounds = array<i64: 1, 4>}, {pipeline_mode = #tpu.pipeline_mode<synchronous>, transform_indices = @transform_3, window_bounds = array<i64: 8, 4>}, {pipeline_mode = #tpu.pipeline_mode<synchronous>, transform_indices = @transform_4, window_bounds = array<i64: 8, 1>}, {transform_indices = @transform_5, window_bounds = array<i64: 1, 8, 256>}]} {
    %c0 = arith.constant 0 : index
    %c0_0 = arith.constant 0 : index
    %0 = vector.load %arg2[%c0, %c0_0] : memref<9x4xf32, #tpu.memory_space<vmem>>, vector<9x4xf32>
    %cst = arith.constant 0.000000e+00 : f32
    %1 = vector.broadcast %cst : f32 to vector<16x16x4xf32>
    %c0_1 = arith.constant 0 : index
    %c0_2 = arith.constant 0 : index
    %c0_3 = arith.constant 0 : index
    %c0_4 = arith.constant 0 : index
    %2 = vector.load %arg1[%c0_1, %c0_2, %c0_3, %c0_4] : memref<1x18x18x4xf32, #tpu.memory_space<vmem>>, vector<1x16x16x4xf32>
    %3 = vector.shape_cast %2 : vector<1x16x16x4xf32> to vector<16x16x4xf32>
    %4 = vector.extract_strided_slice %0 {offsets = [0, 0], sizes = [1, 4], strides = [1, 1]} : vector<9x4xf32> to vector<1x4xf32>
    %5 = vector.shape_cast %4 : vector<1x4xf32> to vector<4xf32>
    %6 = vector.shape_cast %5 : vector<4xf32> to vector<1x1x4xf32>
    %7 = vector.broadcast %6 : vector<1x1x4xf32> to vector<16x16x4xf32>
    %8 = arith.mulf %3, %7 : vector<16x16x4xf32>
    %9 = arith.addf %1, %8 : vector<16x16x4xf32>
    %c0_5 = arith.constant 0 : index
    %c0_6 = arith.constant 0 : index
    %c1 = arith.constant 1 : index
    %c0_7 = arith.constant 0 : index
    %10 = vector.load %arg1[%c0_5, %c0_6, %c1, %c0_7] : memref<1x18x18x4xf32, #tpu.memory_space<vmem>>, vector<1x16x16x4xf32>
    %11 = vector.shape_cast %10 : vector<1x16x16x4xf32> to vector<16x16x4xf32>
    %12 = vector.extract_strided_slice %0 {offsets = [1, 0], sizes = [1, 4], strides = [1, 1]} : vector<9x4xf32> to vector<1x4xf32>
    %13 = vector.shape_cast %12 : vector<1x4xf32> to vector<4xf32>
    %14 = vector.shape_cast %13 : vector<4xf32> to vector<1x1x4xf32>
    %15 = vector.broadcast %14 : vector<1x1x4xf32> to vector<16x16x4xf32>
    %16 = arith.mulf %11, %15 : vector<16x16x4xf32>
    %17 = arith.addf %9, %16 : vector<16x16x4xf32>
    %c0_8 = arith.constant 0 : index
    %c0_9 = arith.constant 0 : index
    %c2 = arith.constant 2 : index
    %c0_10 = arith.constant 0 : index
    %18 = vector.load %arg1[%c0_8, %c0_9, %c2, %c0_10] : memref<1x18x18x4xf32, #tpu.memory_space<vmem>>, vector<1x16x16x4xf32>
    %19 = vector.shape_cast %18 : vector<1x16x16x4xf32> to vector<16x16x4xf32>
    %20 = vector.extract_strided_slice %0 {offsets = [2, 0], sizes = [1, 4], strides = [1, 1]} : vector<9x4xf32> to vector<1x4xf32>
    %21 = vector.shape_cast %20 : vector<1x4xf32> to vector<4xf32>
    %22 = vector.shape_cast %21 : vector<4xf32> to vector<1x1x4xf32>
    %23 = vector.broadcast %22 : vector<1x1x4xf32> to vector<16x16x4xf32>
    %24 = arith.mulf %19, %23 : vector<16x16x4xf32>
    %25 = arith.addf %17, %24 : vector<16x16x4xf32>
    %c0_11 = arith.constant 0 : index
    %c1_12 = arith.constant 1 : index
    %c0_13 = arith.constant 0 : index
    %c0_14 = arith.constant 0 : index
    %26 = vector.load %arg1[%c0_11, %c1_12, %c0_13, %c0_14] : memref<1x18x18x4xf32, #tpu.memory_space<vmem>>, vector<1x16x16x4xf32>
    %27 = vector.shape_cast %26 : vector<1x16x16x4xf32> to vector<16x16x4xf32>
    %28 = vector.extract_strided_slice %0 {offsets = [3, 0], sizes = [1, 4], strides = [1, 1]} : vector<9x4xf32> to vector<1x4xf32>
    %29 = vector.shape_cast %28 : vector<1x4xf32> to vector<4xf32>
    %30 = vector.shape_cast %29 : vector<4xf32> to vector<1x1x4xf32>
    %31 = vector.broadcast %30 : vector<1x1x4xf32> to vector<16x16x4xf32>
    %32 = arith.mulf %27, %31 : vector<16x16x4xf32>
    %33 = arith.addf %25, %32 : vector<16x16x4xf32>
    %c0_15 = arith.constant 0 : index
    %c1_16 = arith.constant 1 : index
    %c1_17 = arith.constant 1 : index
    %c0_18 = arith.constant 0 : index
    %34 = vector.load %arg1[%c0_15, %c1_16, %c1_17, %c0_18] : memref<1x18x18x4xf32, #tpu.memory_space<vmem>>, vector<1x16x16x4xf32>
    %35 = vector.shape_cast %34 : vector<1x16x16x4xf32> to vector<16x16x4xf32>
    %36 = vector.extract_strided_slice %0 {offsets = [4, 0], sizes = [1, 4], strides = [1, 1]} : vector<9x4xf32> to vector<1x4xf32>
    %37 = vector.shape_cast %36 : vector<1x4xf32> to vector<4xf32>
    %38 = vector.shape_cast %37 : vector<4xf32> to vector<1x1x4xf32>
    %39 = vector.broadcast %38 : vector<1x1x4xf32> to vector<16x16x4xf32>
    %40 = arith.mulf %35, %39 : vector<16x16x4xf32>
    %41 = arith.addf %33, %40 : vector<16x16x4xf32>
    %c0_19 = arith.constant 0 : index
    %c1_20 = arith.constant 1 : index
    %c2_21 = arith.constant 2 : index
    %c0_22 = arith.constant 0 : index
    %42 = vector.load %arg1[%c0_19, %c1_20, %c2_21, %c0_22] : memref<1x18x18x4xf32, #tpu.memory_space<vmem>>, vector<1x16x16x4xf32>
    %43 = vector.shape_cast %42 : vector<1x16x16x4xf32> to vector<16x16x4xf32>
    %44 = vector.extract_strided_slice %0 {offsets = [5, 0], sizes = [1, 4], strides = [1, 1]} : vector<9x4xf32> to vector<1x4xf32>
    %45 = vector.shape_cast %44 : vector<1x4xf32> to vector<4xf32>
    %46 = vector.shape_cast %45 : vector<4xf32> to vector<1x1x4xf32>
    %47 = vector.broadcast %46 : vector<1x1x4xf32> to vector<16x16x4xf32>
    %48 = arith.mulf %43, %47 : vector<16x16x4xf32>
    %49 = arith.addf %41, %48 : vector<16x16x4xf32>
    %c0_23 = arith.constant 0 : index
    %c2_24 = arith.constant 2 : index
    %c0_25 = arith.constant 0 : index
    %c0_26 = arith.constant 0 : index
    %50 = vector.load %arg1[%c0_23, %c2_24, %c0_25, %c0_26] : memref<1x18x18x4xf32, #tpu.memory_space<vmem>>, vector<1x16x16x4xf32>
    %51 = vector.shape_cast %50 : vector<1x16x16x4xf32> to vector<16x16x4xf32>
    %52 = vector.extract_strided_slice %0 {offsets = [6, 0], sizes = [1, 4], strides = [1, 1]} : vector<9x4xf32> to vector<1x4xf32>
    %53 = vector.shape_cast %52 : vector<1x4xf32> to vector<4xf32>
    %54 = vector.shape_cast %53 : vector<4xf32> to vector<1x1x4xf32>
    %55 = vector.broadcast %54 : vector<1x1x4xf32> to vector<16x16x4xf32>
    %56 = arith.mulf %51, %55 : vector<16x16x4xf32>
    %57 = arith.addf %49, %56 : vector<16x16x4xf32>
    %c0_27 = arith.constant 0 : index
    %c2_28 = arith.constant 2 : index
    %c1_29 = arith.constant 1 : index
    %c0_30 = arith.constant 0 : index
    %58 = vector.load %arg1[%c0_27, %c2_28, %c1_29, %c0_30] : memref<1x18x18x4xf32, #tpu.memory_space<vmem>>, vector<1x16x16x4xf32>
    %59 = vector.shape_cast %58 : vector<1x16x16x4xf32> to vector<16x16x4xf32>
    %60 = vector.extract_strided_slice %0 {offsets = [7, 0], sizes = [1, 4], strides = [1, 1]} : vector<9x4xf32> to vector<1x4xf32>
    %61 = vector.shape_cast %60 : vector<1x4xf32> to vector<4xf32>
    %62 = vector.shape_cast %61 : vector<4xf32> to vector<1x1x4xf32>
    %63 = vector.broadcast %62 : vector<1x1x4xf32> to vector<16x16x4xf32>
    %64 = arith.mulf %59, %63 : vector<16x16x4xf32>
    %65 = arith.addf %57, %64 : vector<16x16x4xf32>
    %c0_31 = arith.constant 0 : index
    %c2_32 = arith.constant 2 : index
    %c2_33 = arith.constant 2 : index
    %c0_34 = arith.constant 0 : index
    %66 = vector.load %arg1[%c0_31, %c2_32, %c2_33, %c0_34] : memref<1x18x18x4xf32, #tpu.memory_space<vmem>>, vector<1x16x16x4xf32>
    %67 = vector.shape_cast %66 : vector<1x16x16x4xf32> to vector<16x16x4xf32>
    %68 = vector.extract_strided_slice %0 {offsets = [8, 0], sizes = [1, 4], strides = [1, 1]} : vector<9x4xf32> to vector<1x4xf32>
    %69 = vector.shape_cast %68 : vector<1x4xf32> to vector<4xf32>
    %70 = vector.shape_cast %69 : vector<4xf32> to vector<1x1x4xf32>
    %71 = vector.broadcast %70 : vector<1x1x4xf32> to vector<16x16x4xf32>
    %72 = arith.mulf %67, %71 : vector<16x16x4xf32>
    %73 = arith.addf %65, %72 : vector<16x16x4xf32>
    %c0_35 = arith.constant 0 : index
    %c0_36 = arith.constant 0 : index
    %74 = vector.load %arg3[%c0_35, %c0_36] : memref<1x4xf32, #tpu.memory_space<vmem>>, vector<1x4xf32>
    %75 = vector.shape_cast %74 : vector<1x4xf32> to vector<4xf32>
    %76 = vector.shape_cast %75 : vector<4xf32> to vector<1x1x4xf32>
    %77 = vector.broadcast %76 : vector<1x1x4xf32> to vector<16x16x4xf32>
    %78 = arith.addf %73, %77 : vector<16x16x4xf32>
    %cst_37 = arith.constant 0.000000e+00 : f32
    %79 = vector.broadcast %cst_37 : f32 to vector<16x16x4xf32>
    %80 = arith.maximumf %78, %79 : vector<16x16x4xf32>
    %81 = vector.extract_strided_slice %80 {offsets = [0, 0, 0], sizes = [1, 16, 4], strides = [1, 1, 1]} : vector<16x16x4xf32> to vector<1x16x4xf32>
    %82 = vector.shape_cast %81 : vector<1x16x4xf32> to vector<16x4xf32>
    %c0_38 = arith.constant 0 : index
    %c0_39 = arith.constant 0 : index
    %83 = vector.load %arg7[%c0_38, %c0_39] : memref<256x4xf32, #tpu.memory_space<vmem>>, vector<16x4xf32>
    tpu.vector_store %arg7[%c0_38, %c0_39], %82 {strides = array<i32>} : memref<256x4xf32, #tpu.memory_space<vmem>>, vector<16x4xf32>,
    %84 = vector.extract_strided_slice %80 {offsets = [1, 0, 0], sizes = [1, 16, 4], strides = [1, 1, 1]} : vector<16x16x4xf32> to vector<1x16x4xf32>
    %85 = vector.shape_cast %84 : vector<1x16x4xf32> to vector<16x4xf32>
    %c16 = arith.constant 16 : index
    %c0_40 = arith.constant 0 : index
    %86 = vector.load %arg7[%c16, %c0_40] : memref<256x4xf32, #tpu.memory_space<vmem>>, vector<16x4xf32>
    tpu.vector_store %arg7[%c16, %c0_40], %85 {strides = array<i32>} : memref<256x4xf32, #tpu.memory_space<vmem>>, vector<16x4xf32>,
    %87 = vector.extract_strided_slice %80 {offsets = [2, 0, 0], sizes = [1, 16, 4], strides = [1, 1, 1]} : vector<16x16x4xf32> to vector<1x16x4xf32>
    %88 = vector.shape_cast %87 : vector<1x16x4xf32> to vector<16x4xf32>
    %c32 = arith.constant 32 : index
    %c0_41 = arith.constant 0 : index
    %89 = vector.load %arg7[%c32, %c0_41] : memref<256x4xf32, #tpu.memory_space<vmem>>, vector<16x4xf32>
    tpu.vector_store %arg7[%c32, %c0_41], %88 {strides = array<i32>} : memref<256x4xf32, #tpu.memory_space<vmem>>, vector<16x4xf32>,
    %90 = vector.extract_strided_slice %80 {offsets = [3, 0, 0], sizes = [1, 16, 4], strides = [1, 1, 1]} : vector<16x16x4xf32> to vector<1x16x4xf32>
    %91 = vector.shape_cast %90 : vector<1x16x4xf32> to vector<16x4xf32>
    %c48 = arith.constant 48 : index
    %c0_42 = arith.constant 0 : index
    %92 = vector.load %arg7[%c48, %c0_42] : memref<256x4xf32, #tpu.memory_space<vmem>>, vector<16x4xf32>
    tpu.vector_store %arg7[%c48, %c0_42], %91 {strides = array<i32>} : memref<256x4xf32, #tpu.memory_space<vmem>>, vector<16x4xf32>,
    %93 = vector.extract_strided_slice %80 {offsets = [4, 0, 0], sizes = [1, 16, 4], strides = [1, 1, 1]} : vector<16x16x4xf32> to vector<1x16x4xf32>
    %94 = vector.shape_cast %93 : vector<1x16x4xf32> to vector<16x4xf32>
    %c64 = arith.constant 64 : index
    %c0_43 = arith.constant 0 : index
    %95 = vector.load %arg7[%c64, %c0_43] : memref<256x4xf32, #tpu.memory_space<vmem>>, vector<16x4xf32>
    tpu.vector_store %arg7[%c64, %c0_43], %94 {strides = array<i32>} : memref<256x4xf32, #tpu.memory_space<vmem>>, vector<16x4xf32>,
    %96 = vector.extract_strided_slice %80 {offsets = [5, 0, 0], sizes = [1, 16, 4], strides = [1, 1, 1]} : vector<16x16x4xf32> to vector<1x16x4xf32>
    %97 = vector.shape_cast %96 : vector<1x16x4xf32> to vector<16x4xf32>
    %c80 = arith.constant 80 : index
    %c0_44 = arith.constant 0 : index
    %98 = vector.load %arg7[%c80, %c0_44] : memref<256x4xf32, #tpu.memory_space<vmem>>, vector<16x4xf32>
    tpu.vector_store %arg7[%c80, %c0_44], %97 {strides = array<i32>} : memref<256x4xf32, #tpu.memory_space<vmem>>, vector<16x4xf32>,
    %99 = vector.extract_strided_slice %80 {offsets = [6, 0, 0], sizes = [1, 16, 4], strides = [1, 1, 1]} : vector<16x16x4xf32> to vector<1x16x4xf32>
    %100 = vector.shape_cast %99 : vector<1x16x4xf32> to vector<16x4xf32>
    %c96 = arith.constant 96 : index
    %c0_45 = arith.constant 0 : index
    %101 = vector.load %arg7[%c96, %c0_45] : memref<256x4xf32, #tpu.memory_space<vmem>>, vector<16x4xf32>
    tpu.vector_store %arg7[%c96, %c0_45], %100 {strides = array<i32>} : memref<256x4xf32, #tpu.memory_space<vmem>>, vector<16x4xf32>,
    %102 = vector.extract_strided_slice %80 {offsets = [7, 0, 0], sizes = [1, 16, 4], strides = [1, 1, 1]} : vector<16x16x4xf32> to vector<1x16x4xf32>
    %103 = vector.shape_cast %102 : vector<1x16x4xf32> to vector<16x4xf32>
    %c112 = arith.constant 112 : index
    %c0_46 = arith.constant 0 : index
    %104 = vector.load %arg7[%c112, %c0_46] : memref<256x4xf32, #tpu.memory_space<vmem>>, vector<16x4xf32>
    tpu.vector_store %arg7[%c112, %c0_46], %103 {strides = array<i32>} : memref<256x4xf32, #tpu.memory_space<vmem>>, vector<16x4xf32>,
    %105 = vector.extract_strided_slice %80 {offsets = [8, 0, 0], sizes = [1, 16, 4], strides = [1, 1, 1]} : vector<16x16x4xf32> to vector<1x16x4xf32>
    %106 = vector.shape_cast %105 : vector<1x16x4xf32> to vector<16x4xf32>
    %c128 = arith.constant 128 : index
    %c0_47 = arith.constant 0 : index
    %107 = vector.load %arg7[%c128, %c0_47] : memref<256x4xf32, #tpu.memory_space<vmem>>, vector<16x4xf32>
    tpu.vector_store %arg7[%c128, %c0_47], %106 {strides = array<i32>} : memref<256x4xf32, #tpu.memory_space<vmem>>, vector<16x4xf32>,
    %108 = vector.extract_strided_slice %80 {offsets = [9, 0, 0], sizes = [1, 16, 4], strides = [1, 1, 1]} : vector<16x16x4xf32> to vector<1x16x4xf32>
    %109 = vector.shape_cast %108 : vector<1x16x4xf32> to vector<16x4xf32>
    %c144 = arith.constant 144 : index
    %c0_48 = arith.constant 0 : index
    %110 = vector.load %arg7[%c144, %c0_48] : memref<256x4xf32, #tpu.memory_space<vmem>>, vector<16x4xf32>
    tpu.vector_store %arg7[%c144, %c0_48], %109 {strides = array<i32>} : memref<256x4xf32, #tpu.memory_space<vmem>>, vector<16x4xf32>,
    %111 = vector.extract_strided_slice %80 {offsets = [10, 0, 0], sizes = [1, 16, 4], strides = [1, 1, 1]} : vector<16x16x4xf32> to vector<1x16x4xf32>
    %112 = vector.shape_cast %111 : vector<1x16x4xf32> to vector<16x4xf32>
    %c160 = arith.constant 160 : index
    %c0_49 = arith.constant 0 : index
    %113 = vector.load %arg7[%c160, %c0_49] : memref<256x4xf32, #tpu.memory_space<vmem>>, vector<16x4xf32>
    tpu.vector_store %arg7[%c160, %c0_49], %112 {strides = array<i32>} : memref<256x4xf32, #tpu.memory_space<vmem>>, vector<16x4xf32>,
    %114 = vector.extract_strided_slice %80 {offsets = [11, 0, 0], sizes = [1, 16, 4], strides = [1, 1, 1]} : vector<16x16x4xf32> to vector<1x16x4xf32>
    %115 = vector.shape_cast %114 : vector<1x16x4xf32> to vector<16x4xf32>
    %c176 = arith.constant 176 : index
    %c0_50 = arith.constant 0 : index
    %116 = vector.load %arg7[%c176, %c0_50] : memref<256x4xf32, #tpu.memory_space<vmem>>, vector<16x4xf32>
    tpu.vector_store %arg7[%c176, %c0_50], %115 {strides = array<i32>} : memref<256x4xf32, #tpu.memory_space<vmem>>, vector<16x4xf32>,
    %117 = vector.extract_strided_slice %80 {offsets = [12, 0, 0], sizes = [1, 16, 4], strides = [1, 1, 1]} : vector<16x16x4xf32> to vector<1x16x4xf32>
    %118 = vector.shape_cast %117 : vector<1x16x4xf32> to vector<16x4xf32>
    %c192 = arith.constant 192 : index
    %c0_51 = arith.constant 0 : index
    %119 = vector.load %arg7[%c192, %c0_51] : memref<256x4xf32, #tpu.memory_space<vmem>>, vector<16x4xf32>
    tpu.vector_store %arg7[%c192, %c0_51], %118 {strides = array<i32>} : memref<256x4xf32, #tpu.memory_space<vmem>>, vector<16x4xf32>,
    %120 = vector.extract_strided_slice %80 {offsets = [13, 0, 0], sizes = [1, 16, 4], strides = [1, 1, 1]} : vector<16x16x4xf32> to vector<1x16x4xf32>
    %121 = vector.shape_cast %120 : vector<1x16x4xf32> to vector<16x4xf32>
    %c208 = arith.constant 208 : index
    %c0_52 = arith.constant 0 : index
    %122 = vector.load %arg7[%c208, %c0_52] : memref<256x4xf32, #tpu.memory_space<vmem>>, vector<16x4xf32>
    tpu.vector_store %arg7[%c208, %c0_52], %121 {strides = array<i32>} : memref<256x4xf32, #tpu.memory_space<vmem>>, vector<16x4xf32>,
    %123 = vector.extract_strided_slice %80 {offsets = [14, 0, 0], sizes = [1, 16, 4], strides = [1, 1, 1]} : vector<16x16x4xf32> to vector<1x16x4xf32>
    %124 = vector.shape_cast %123 : vector<1x16x4xf32> to vector<16x4xf32>
    %c224 = arith.constant 224 : index
    %c0_53 = arith.constant 0 : index
    %125 = vector.load %arg7[%c224, %c0_53] : memref<256x4xf32, #tpu.memory_space<vmem>>, vector<16x4xf32>
    tpu.vector_store %arg7[%c224, %c0_53], %124 {strides = array<i32>} : memref<256x4xf32, #tpu.memory_space<vmem>>, vector<16x4xf32>,
    %126 = vector.extract_strided_slice %80 {offsets = [15, 0, 0], sizes = [1, 16, 4], strides = [1, 1, 1]} : vector<16x16x4xf32> to vector<1x16x4xf32>
    %127 = vector.shape_cast %126 : vector<1x16x4xf32> to vector<16x4xf32>
    %c240 = arith.constant 240 : index
    %c0_54 = arith.constant 0 : index
    %128 = vector.load %arg7[%c240, %c0_54] : memref<256x4xf32, #tpu.memory_space<vmem>>, vector<16x4xf32>
    tpu.vector_store %arg7[%c240, %c0_54], %127 {strides = array<i32>} : memref<256x4xf32, #tpu.memory_space<vmem>>, vector<16x4xf32>,
    %c0_55 = arith.constant 0 : index
    %c0_56 = arith.constant 0 : index
    %129 = vector.load %arg4[%c0_55, %c0_56] : memref<8x4xf32, #tpu.memory_space<vmem>>, vector<8x4xf32>
    %c0_57 = arith.constant 0 : index
    %c0_58 = arith.constant 0 : index
    %130 = vector.load %arg7[%c0_57, %c0_58] : memref<256x4xf32, #tpu.memory_space<vmem>>, vector<256x4xf32>
    %cst_59 = arith.constant dense<0.000000e+00> : vector<8x256xf32>
    %131 = tpu.matmul %129, %130, %cst_59 {dimension_numbers = #tpu.dot_dimension_numbers<[1], [1], [0], [0], [0, 0, 1, 0], [], []>} : vector<8x4xf32>, vector<256x4xf32>, vector<8x256xf32> -> vector<8x256xf32>
    %c0_60 = arith.constant 0 : index
    %c0_61 = arith.constant 0 : index
    %132 = vector.load %arg5[%c0_60, %c0_61] : memref<8x1xf32, #tpu.memory_space<vmem>>, vector<8x1xf32>
    %133 = vector.broadcast %132 : vector<8x1xf32> to vector<8x256xf32>
    %134 = arith.addf %131, %133 : vector<8x256xf32>
    %cst_62 = arith.constant 0.000000e+00 : f32
    %135 = vector.broadcast %cst_62 : f32 to vector<8x256xf32>
    %136 = arith.maximumf %134, %135 : vector<8x256xf32>
    %c0_63 = arith.constant 0 : index
    %c0_64 = arith.constant 0 : index
    %c0_65 = arith.constant 0 : index
    %137 = vector.load %arg6[%c0_63, %c0_64, %c0_65] : memref<1x8x256xf32, #tpu.memory_space<vmem>>, vector<1x8x256xf32>
    %138 = vector.shape_cast %137 : vector<1x8x256xf32> to vector<8x256xf32>
    %139 = vector.shape_cast %136 : vector<8x256xf32> to vector<1x8x256xf32>
    tpu.vector_store %arg6[%c0_63, %c0_64, %c0_65], %139 {strides = array<i32>} : memref<1x8x256xf32, #tpu.memory_space<vmem>>, vector<1x8x256xf32>,
    return
  }
  func.func @transform_0(%arg0: i32) -> (i32, i32, i32, i32) {
    %c0_i32 = arith.constant 0 : i32
    %c0_i32_0 = arith.constant 0 : i32
    %c0_i32_1 = arith.constant 0 : i32
    %c0_i32_2 = arith.constant 0 : i32
    return %arg0, %c0_i32, %c0_i32_0, %c0_i32_1 : i32, i32, i32, i32
  }
  func.func @transform_1(%arg0: i32) -> (i32, i32) {
    %c0_i32 = arith.constant 0 : i32
    %c0_i32_0 = arith.constant 0 : i32
    %c0_i32_1 = arith.constant 0 : i32
    return %c0_i32, %c0_i32_0 : i32, i32
  }
  func.func @transform_2(%arg0: i32) -> (i32, i32) {
    %c0_i32 = arith.constant 0 : i32
    %c0_i32_0 = arith.constant 0 : i32
    %c0_i32_1 = arith.constant 0 : i32
    return %c0_i32, %c0_i32_0 : i32, i32
  }
  func.func @transform_3(%arg0: i32) -> (i32, i32) {
    %c0_i32 = arith.constant 0 : i32
    %c0_i32_0 = arith.constant 0 : i32
    %c0_i32_1 = arith.constant 0 : i32
    return %c0_i32, %c0_i32_0 : i32, i32
  }
  func.func @transform_4(%arg0: i32) -> (i32, i32) {
    %c0_i32 = arith.constant 0 : i32
    %c0_i32_0 = arith.constant 0 : i32
    %c0_i32_1 = arith.constant 0 : i32
    return %c0_i32, %c0_i32_0 : i32, i32
  }
  func.func @transform_5(%arg0: i32) -> (i32, i32, i32) {
    %c0_i32 = arith.constant 0 : i32
    %c0_i32_0 = arith.constant 0 : i32
    %c0_i32_1 = arith.constant 0 : i32
    return %arg0, %c0_i32, %c0_i32_0 : i32, i32, i32
  }
}

</mosaic_0001>

<bundles_post_ra>
// kernel: mobile_block_forward.1
= control target key start
LH: loop header
LB: loop body
LE: loop exit
PB: predicated region body
PF: predicated region fallthrough
CT: control target
= control target key end

     0   :  { %v54_v0 = vlaneseq  ;;  %vm995_vm0 = vcmask 31744   ;;  %s2855_s1 = inlined_call_operand.vmem [shape: f32[9,4], index: 1, kind: input, shape index: {}]   ;;  %s2856_s0 = inlined_call_operand.vmem [shape: f32[1,18,18,4], index: 0, kind: input, shape index: {}]   ;;  %s2857_s2 = inlined_call_operand.vmem [shape: f32[1,4], index: 2, kind: input, shape index: {}]   ;;  %s2858_s3 = inlined_call_operand.vmem [shape: f32[8,4], index: 3, kind: input, shape index: {}]   ;;  %s2859_s4 = inlined_call_operand.vmem [shape: f32[8,1], index: 4, kind: input, shape index: {}]   ;;  %s2860_s5 = inlined_call_operand.vmem [shape: f32[1,8,256], index: 5, kind: output, shape index: {}]  }
   0x1   :  { %v20_v2 = vld [vmem:[%s2855_s1] sm:$0xff]  ;;  %v39_v4 = vld [vmem:[%s2856_s0 + $0xc8] sm:$0xff]  ;;  %v1620_v19 = vld [vmem:[%s2856_s0 + $0xd8] sm:$0xff] }
   0x2   :  { %v55_v1 = vshrl.u32 %v54_v0, 7  ;;  %v38_v3 = vld [vmem:[%s2856_s0 + $0xc0] sm:$0xff]  ;;  %v139_v10 = vld [vmem:[%s2856_s0 + $0xc9] sm:$0xff]  ;;  %v1667_v35 = vld [vmem:[%s2856_s0 + $0xf8] sm:$0xff] }
   0x3   :  { %v138_v9 = vld [vmem:[%s2856_s0 + $0xc1] sm:$0xff]  ;;  %v239_v17 = vld [vmem:[%s2856_s0 + $0xca] sm:$0xff]  ;;  %v1632_v22 = vld [vmem:[%s2856_s0 + $0xd9] sm:$0xff] }
   0x4   :  { %v56_v5 = vsub.s32 0, %v55_v1  ;;  %v156_v6 = vsub.s32 1, %v55_v1  ;;  %v256_v7 = vsub.s32 2, %v55_v1  ;;  %v357_v8 = vsub.s32 3, %v55_v1  ;;  %v238_v11 = vld [vmem:[%s2856_s0 + $0xc2] sm:$0xff]  ;;  %v1644_v25 = vld [vmem:[%s2856_s0 + $0xda] sm:$0xff]  ;;  %vm1923_vm1 = vmpackc.low %vm995_vm0, %vm995_vm0 }
   0x5   :  { %v457_v12 = vsub.s32 4, %v55_v1  ;;  %v557_v13 = vsub.s32 5, %v55_v1  ;;  %v658_v14 = vsub.s32 6, %v55_v1  ;;  %v1625_v20 = vld [vmem:[%s2856_s0 + $0xe0] sm:$0xff]  ;;  %v758_v28 = vsub.s32 7, %v55_v1  ;;  %v1662_v34 = vld [vmem:[%s2856_s0 + $0xf0] sm:$0xff] }
   0x6   :  { %v1608_v15 = vrot.slane %v20_v2, %v56_v5  ;;  %v1610_v16 = vrot.slane %v20_v2, %v156_v6  ;;  %v1615_v18 = vrot.slane %v20_v2, %v256_v7  ;;  %v1627_v21 = vrot.slane %v20_v2, %v357_v8  ;;  %v1637_v23 = vld [vmem:[%s2856_s0 + $0xe1] sm:$0xff]  ;;  %v1683_v41 = vld [vmem:[%s2856_s0 + $0xf2] sm:$0xff]  ;;  %v123_v60 = vld [vmem:[%s2856_s0 + $0x9] sm:$0xff] }
   0x7   :  { %v1639_v24 = vrot.slane %v20_v2, %v457_v12  ;;  %v1646_v26 = vrot.slane %v20_v2, %v557_v13  ;;  %v1648_v27 = vrot.slane %v20_v2, %v658_v14  ;;  %v1657_v33 = vld [vmem:[%s2856_s0 + $0xe2] sm:$0xff]  ;;  %v1688_v42 = vld [vmem:[%s2856_s0 + $0xfa] sm:$0xff]  ;;  %v1714_v54 = vld [vmem:[%s2856_s0 + $0xf1] sm:$0xff]  ;;  %v1721_v58 = vrot.slane %v20_v2, %v758_v28 }
   0x8   :  { %v74_v29 = vmul.f32 %v1608_v15, %v38_v3  ;;  %v75_v30 = vmul.f32 %v1608_v15, %v39_v4  ;;  %v174_v31 = vmul.f32 %v1610_v16, %v138_v9  ;;  %v175_v32 = vmul.f32 %v1610_v16, %v139_v10  ;;  %v1672_v36 = vld [vmem:[%s2855_s1 + $0x8] ss:$0 sm:$0xff]  ;;  %v22_v47 = vld [vmem:[%s2856_s0] sm:$0xff]  ;;  %v223_v62 = vld [vmem:[%s2856_s0 + $0xa] sm:$0xff] }
   0x9   :  { %v274_v37 = vmul.f32 %v1615_v18, %v238_v11  ;;  %v275_v38 = vmul.f32 %v1615_v18, %v239_v17  ;;  %v375_v39 = vmul.f32 %v1620_v19, %v1627_v21  ;;  %v376_v40 = vmul.f32 %v1625_v20, %v1627_v21  ;;  %v23_v48 = vld [vmem:[%s2856_s0 + $0x8] sm:$0xff]  ;;  %v1719_v55 = vld [vmem:[%s2856_s0 + $0xf9] sm:$0xff] }
   0xa   :  { %v206_v43 = vadd.f32 %v174_v31, %v74_v29  ;;  %v207_v44 = vadd.f32 %v175_v32, %v75_v30  ;;  %v475_v45 = vmul.f32 %v1632_v22, %v1639_v24  ;;  %v476_v46 = vmul.f32 %v1637_v23, %v1639_v24  ;;  %v122_v49 = vld [vmem:[%s2856_s0 + $0x1] sm:$0xff]  ;;  %v1744_v3 = vld [vmem:[%s2856_s0 + $0x18] sm:$0xff] }
   0xb   :  { %v575_v50 = vmul.f32 %v1644_v25, %v1646_v26  ;;  %v576_v51 = vmul.f32 %v1657_v33, %v1646_v26  ;;  %v676_v52 = vmul.f32 %v1662_v34, %v1648_v27  ;;  %v677_v53 = vmul.f32 %v1667_v35, %v1648_v27  ;;  %v222_v61 = vld [vmem:[%s2856_s0 + $0x2] sm:$0xff]  ;;  %v1758_v9 = vld [vmem:[%s2856_s0 + $0x19] sm:$0xff] }
   0xc   :  { %v306_v56 = vadd.f32 %v274_v37, %v206_v43  ;;  %v307_v57 = vadd.f32 %v275_v38, %v207_v44  ;;  %v1725_v59 = vmul.f32 %v1672_v36, %v1683_v41  ;;  %v877_v63 = vmul.f32 %v1672_v36, %v1688_v42  ;;  %v1749_v4 = vld [vmem:[%s2856_s0 + $0x20] sm:$0xff]  ;;  %v1785_v37 = vld [vmem:[%s2856_s0 + $0x30] sm:$0xff]  ;;  %v1790_v38 = vld [vmem:[%s2856_s0 + $0x38] sm:$0xff] }
   0xd   :  { %v58_v0 = vmul.f32 %v1608_v15, %v22_v47  ;;  %v59_v1 = vmul.f32 %v1608_v15, %v23_v48  ;;  %v158_v2 = vmul.f32 %v1610_v16, %v122_v49  ;;  %v776_v7 = vmul.f32 %v1714_v54, %v1721_v58  ;;  %v1763_v10 = vld [vmem:[%s2856_s0 + $0x21] sm:$0xff] }
   0xe   :  { %v407_v5 = vadd.f32 %v375_v39, %v306_v56  ;;  %v408_v6 = vadd.f32 %v376_v40, %v307_v57  ;;  %v777_v8 = vmul.f32 %v1719_v55, %v1721_v58  ;;  %v159_v11 = vmul.f32 %v1610_v16, %v123_v60  ;;  %v1771_v17 = vld [vmem:[%s2856_s0 + $0x1a] sm:$0xff]  ;;  %v1776_v28 = vld [vmem:[%s2856_s0 + $0x22] sm:$0xff]  ;;  %v1813_v57 = vld [vmem:[%s2856_s0 + $0x32] sm:$0xff] }
   0xf   :  { %v190_v12 = vadd.f32 %v158_v2, %v58_v0  ;;  %v258_v13 = vmul.f32 %v1615_v18, %v222_v61  ;;  %v259_v14 = vmul.f32 %v1615_v18, %v223_v62  ;;  %v359_v31 = vmul.f32 %v1744_v3, %v1627_v21  ;;  %v1818_v60 = vld [vmem:[%s2856_s0 + $0x3a] sm:$0xff] }
  0x10   :  { %v507_v29 = vadd.f32 %v475_v45, %v407_v5  ;;  %v508_v30 = vadd.f32 %v476_v46, %v408_v6  ;;  %v360_v32 = vmul.f32 %v1749_v4, %v1627_v21  ;;  %v191_v39 = vadd.f32 %v159_v11, %v59_v1  ;;  %v1799_v45 = vld [vmem:[%s2856_s0 + $0x31] sm:$0xff]  ;;  %v1804_v46 = vld [vmem:[%s2856_s0 + $0x39] sm:$0xff] }
  0x11   :  { %v290_v40 = vadd.f32 %v258_v13, %v190_v12  ;;  %v459_v43 = vmul.f32 %v1758_v9, %v1639_v24  ;;  %v460_v44 = vmul.f32 %v1763_v10, %v1639_v24  ;;  %v559_v49 = vmul.f32 %v1771_v17, %v1646_v26 }
  0x12   :  { %v607_v47 = vadd.f32 %v575_v50, %v507_v29  ;;  %v608_v48 = vadd.f32 %v576_v51, %v508_v30  ;;  %v560_v56 = vmul.f32 %v1776_v28, %v1646_v26  ;;  %v291_v61 = vadd.f32 %v259_v14, %v191_v39  ;;  %v1839_v30 = vld [vmem:[%s2857_s2] ss:$0 sm:$0xff] }
  0x13   :  { %v391_v50 = vadd.f32 %v359_v31, %v290_v40  ;;  %v660_v51 = vmul.f32 %v1785_v37, %v1648_v27  ;;  %v661_v62 = vmul.f32 %v1790_v38, %v1648_v27  ;;  %v760_v2 = vmul.f32 %v1799_v45, %v1721_v58 }
  0x14   :  { %v708_v0 = vadd.f32 %v676_v52, %v607_v47  ;;  %v709_v1 = vadd.f32 %v677_v53, %v608_v48  ;;  %v761_v5 = vmul.f32 %v1804_v46, %v1721_v58  ;;  %v392_v6 = vadd.f32 %v360_v32, %v291_v61 }
  0x15   :  { %v491_v11 = vadd.f32 %v459_v43, %v391_v50  ;;  %v860_v12 = vmul.f32 %v1672_v36, %v1813_v57  ;;  %v861_v13 = vmul.f32 %v1672_v36, %v1818_v60  ;;  %v76_v52 = vmul.f32 %v1620_v19, %v1608_v15 }
  0x16   :  { %v808_v14 = vadd.f32 %v776_v7, %v708_v0  ;;  %v809_v29 = vadd.f32 %v777_v8, %v709_v1  ;;  %v77_v53 = vmul.f32 %v1625_v20, %v1608_v15  ;;  %v492_v31 = vadd.f32 %v460_v44, %v392_v6 }
  0x17   :  { %v591_v32 = vadd.f32 %v559_v49, %v491_v11  ;;  %v176_v39 = vmul.f32 %v1632_v22, %v1610_v16  ;;  %v177_v7 = vmul.f32 %v1637_v23, %v1610_v16  ;;  %v276_v19 = vmul.f32 %v1644_v25, %v1615_v18 }
  0x18   :  { %v908_v8 = vadd.f32 %v1725_v59, %v808_v14  ;;  %v909_v40 = vadd.f32 %v877_v63, %v809_v29  ;;  %v277_v20 = vmul.f32 %v1657_v33, %v1615_v18  ;;  %v592_v43 = vadd.f32 %v560_v56, %v492_v31  ;;  %v1859_v33 = vld [vmem:[%s2856_s0 + $0x108] sm:$0xff]  ;;  %v1864_v56 = vld [vmem:[%s2856_s0 + $0x110] sm:$0xff] }
  0x19   :  { %v692_v47 = vadd.f32 %v660_v51, %v591_v32  ;;  %v208_v48 = vadd.f32 %v176_v39, %v76_v52  ;;  %v209_v44 = vadd.f32 %v177_v7, %v77_v53  ;;  %v377_v23 = vmul.f32 %v1662_v34, %v1627_v21  ;;  %v1878_v52 = vld [vmem:[%s2856_s0 + $0x111] sm:$0xff] }
  0x1a   :  { %v947_v49 = vadd.f32 %v1839_v30, %v908_v8  ;;  %v948_v22 = vadd.f32 %v1839_v30, %v909_v40  ;;  %v378_v59 = vmul.f32 %v1667_v35, %v1627_v21  ;;  %v693_v63 = vadd.f32 %v661_v62, %v592_v43  ;;  %v1883_v53 = vld [vmem:[%s2856_s0 + $0x10a] sm:$0xff]  ;;  %v1888_v31 = vld [vmem:[%s2856_s0 + $0x112] sm:$0xff] }
  0x1b   :  { %v792_v61 = vadd.f32 %v760_v2, %v692_v47  ;;  %v308_v25 = vadd.f32 %v276_v19, %v208_v48  ;;  %v309_v50 = vadd.f32 %v277_v20, %v209_v44  ;;  %v477_v1 = vmul.f32 %v1714_v54, %v1639_v24  ;;  %v1873_v2 = vld [vmem:[%s2856_s0 + $0x109] sm:$0xff] }
  0x1c   :  { %v979_v51 = vmax.f32 %v947_v49, 0.0  ;;  %v980_v0 = vmax.f32 %v948_v22, 0.0  ;;  %v478_v62 = vmul.f32 %v1719_v55, %v1639_v24  ;;  %v793_v6 = vadd.f32 %v761_v5, %v693_v63 }
  0x1d   :  { %v892_v11 = vadd.f32 %v860_v12, %v792_v61  ;;  %v409_v14 = vadd.f32 %v377_v23, %v308_v25  ;;  %v410_v29 = vadd.f32 %v378_v59, %v309_v50  ;;  %v577_v5 = vmul.f32 %v1683_v41, %v1646_v26 }
  0x1e   :  { %1012 = vst.msk [vmem:[#allocation2 + $0x80] sm:$0xff] %vm995_vm0, %v979_v51  ;;  %1013 = vst.msk [vmem:[#allocation2 + $0x88] sm:$0xff] %vm995_vm0, %v980_v0  ;;  %v578_v12 = vmul.f32 %v1688_v42, %v1646_v26  ;;  %v678_v32 = vmul.f32 %v1859_v33, %v1648_v27  ;;  %v679_v39 = vmul.f32 %v1864_v56, %v1648_v27 }
  0x1f   :  { %v893_v7 = vadd.f32 %v861_v13, %v793_v6  ;;  %v931_v8 = vadd.f32 %v1839_v30, %v892_v11  ;;  %v509_v40 = vadd.f32 %v477_v1, %v409_v14  ;;  %v510_v19 = vadd.f32 %v478_v62, %v410_v29  ;;  %v1934_v62 = vld [vmem:[%s2856_s0 + $0x48] sm:$0xff] }
  0x20   :  { %v778_v20 = vmul.f32 %v1873_v2, %v1721_v58  ;;  %v779_v43 = vmul.f32 %v1878_v52, %v1721_v58  ;;  %v878_v47 = vmul.f32 %v1672_v36, %v1883_v53  ;;  %v879_v48 = vmul.f32 %v1672_v36, %v1888_v31 }
  0x21   :  { %v932_v44 = vadd.f32 %v1839_v30, %v893_v7  ;;  %v963_v49 = vmax.f32 %v931_v8, 0.0  ;;  %v609_v13 = vadd.f32 %v577_v5, %v509_v40  ;;  %v610_v22 = vadd.f32 %v578_v12, %v510_v19  ;;  %v1944_v5 = vld [vmem:[%s2856_s0 + $0x50] sm:$0xff] }
  0x22   :  { %v60_v23 = vmul.f32 %v1744_v3, %v1608_v15  ;;  %v61_v59 = vmul.f32 %v1749_v4, %v1608_v15  ;;  %v160_v63 = vmul.f32 %v1758_v9, %v1610_v16  ;;  %v161_v61 = vmul.f32 %v1763_v10, %v1610_v16  ;;  %v1951_v8 = vld [vmem:[%s2856_s0 + $0x49] sm:$0xff]  ;;  %v1956_v40 = vld [vmem:[%s2856_s0 + $0x51] sm:$0xff] }
  0x23   :  { %v964_v25 = vmax.f32 %v932_v44, 0.0  ;;  %996 = vst.msk [vmem:[#allocation2] sm:$0xff] %vm995_vm0, %v963_v49  ;;  %v710_v50 = vadd.f32 %v678_v32, %v609_v13  ;;  %v711_v51 = vadd.f32 %v679_v39, %v610_v22  ;;  %v260_v0 = vmul.f32 %v1771_v17, %v1615_v18  ;;  %v1965_v49 = vld [vmem:[%s2856_s0 + $0x4a] sm:$0xff]  ;;  %v1970_v13 = vld [vmem:[%s2856_s0 + $0x52] sm:$0xff] }
  0x24   :  { %v192_v4 = vadd.f32 %v160_v63, %v60_v23  ;;  %v193_v1 = vadd.f32 %v161_v61, %v61_v59  ;;  %v261_v9 = vmul.f32 %v1776_v28, %v1615_v18  ;;  %v361_v10 = vmul.f32 %v1785_v37, %v1627_v21 }
  0x25   :  { %v1045_v17 = vld [vmem:[#allocation2 + $0x80] sm:$0xff]  ;;  %v1046_v6 = vld [vmem:[#allocation2 + $0x88] sm:$0xff]  ;;  %997 = vst.msk [vmem:[#allocation2 + $0x8] sm:$0xff] %vm995_vm0, %v964_v25  ;;  %v810_v11 = vadd.f32 %v778_v20, %v710_v50  ;;  %v811_v14 = vadd.f32 %v779_v43, %v711_v51  ;;  %v362_v29 = vmul.f32 %v1790_v38, %v1627_v21  ;;  %v461_v28 = vmul.f32 %v1799_v45, %v1639_v24 }
  0x26   :  { %v1506_v12 = vpack.c.bf16 %v1046_v6, %v1045_v17  ;;  %v292_v32 = vadd.f32 %v260_v0, %v192_v4  ;;  %v293_v39 = vadd.f32 %v261_v9, %v193_v1  ;;  %v462_v7 = vmul.f32 %v1804_v46, %v1639_v24 }
  0x27   :  { %v910_v19 = vadd.f32 %v878_v47, %v810_v11  ;;  %v911_v20 = vadd.f32 %v879_v48, %v811_v14  ;;  %v561_v43 = vmul.f32 %v1813_v57, %v1646_v26  ;;  %v562_v44 = vmul.f32 %v1818_v60, %v1646_v26 }
  0x28   :  { %1508 = vmatprep.subr.msk.bf16.mxu0 %vm1923_vm1, %v1506_v12  ;;  %v393_v47 = vadd.f32 %v361_v10, %v292_v32  ;;  %v394_v48 = vadd.f32 %v362_v29, %v293_v39  ;;  %v662_v22 = vmul.f32 %v1934_v62, %v1648_v27  ;;  %v663_v23 = vmul.f32 %v1944_v5, %v1648_v27 }
  0x29   :  { %v949_v59 = vadd.f32 %v1839_v30, %v910_v19  ;;  %v950_v63 = vadd.f32 %v1839_v30, %v911_v20  ;;  %v762_v61 = vmul.f32 %v1951_v8, %v1721_v58  ;;  %v763_v25 = vmul.f32 %v1956_v40, %v1721_v58 }
  0x2a   :  { %v1029_v50 = vld [vmem:[#allocation2] sm:$0xff]  ;;  %v493_v51 = vadd.f32 %v461_v28, %v393_v47  ;;  %v494_v0 = vadd.f32 %v462_v7, %v394_v48  ;;  %v862_v4 = vmul.f32 %v1672_v36, %v1965_v49  ;;  %v863_v1 = vmul.f32 %v1672_v36, %v1970_v13 }
  0x2b   :  { %v981_v9 = vmax.f32 %v949_v59, 0.0  ;;  %v982_v10 = vmax.f32 %v950_v63, 0.0  ;;  %v78_v17 = vmul.f32 %v1662_v34, %v1608_v15  ;;  %v79_v6 = vmul.f32 %v1667_v35, %v1608_v15 }
  0x2c   :  { %v1030_v11 = vld [vmem:[#allocation2 + $0x8] sm:$0xff]  ;;  %v593_v14 = vadd.f32 %v561_v43, %v493_v51  ;;  %v594_v29 = vadd.f32 %v562_v44, %v494_v0  ;;  %v178_v28 = vmul.f32 %v1714_v54, %v1610_v16  ;;  %v179_v12 = vmul.f32 %v1719_v55, %v1610_v16  ;;  %v2007_v55 = vld [vmem:[%s2856_s0 + $0x120] sm:$0xff] }
  0x2d   :  { %v1509_v32 = vpack.c.bf16 %v1030_v11, %v1029_v50  ;;  %1014 = vst.msk [vmem:[#allocation2 + $0x90] sm:$0xff] %vm995_vm0, %v981_v9  ;;  %1015 = vst.msk [vmem:[#allocation2 + $0x98] sm:$0xff] %vm995_vm0, %v982_v10  ;;  %v278_v34 = vmul.f32 %v1683_v41, %v1615_v18  ;;  %v279_v35 = vmul.f32 %v1688_v42, %v1615_v18  ;;  %v2012_v43 = vld [vmem:[%s2856_s0 + $0x128] sm:$0xff] }
  0x2e   :  { %v379_v39 = vmul.f32 %v1859_v33, %v1627_v21  ;;  %v694_v7 = vadd.f32 %v662_v22, %v593_v14  ;;  %v695_v19 = vadd.f32 %v663_v23, %v594_v29  ;;  %v210_v54 = vadd.f32 %v178_v28, %v78_v17  ;;  %v2017_v41 = vld [vmem:[%s2856_s0 + $0x121] sm:$0xff]  ;;  %v2032_v50 = vld [vmem:[%s2856_s0 + $0x129] sm:$0xff] }
  0x2f   :  { %v211_v20 = vadd.f32 %v179_v12, %v79_v6  ;;  %1511 = vmatpush3.bf16.xpose.msk.msra.mxu0 %vm1923_vm1, %v1509_v32  ;;  %v380_v42 = vmul.f32 %v1864_v56, %v1627_v21  ;;  %v479_v44 = vmul.f32 %v1873_v2, %v1639_v24  ;;  %v480_v47 = vmul.f32 %v1878_v52, %v1639_v24  ;;  %v2037_v51 = vld [vmem:[%s2856_s0 + $0x122] sm:$0xff]  ;;  %v2042_v0 = vld [vmem:[%s2856_s0 + $0x12a] sm:$0xff] }
  0x30   :  { %v579_v48 = vmul.f32 %v1883_v53, %v1646_v26  ;;  %v794_v22 = vadd.f32 %v762_v61, %v694_v7  ;;  %v795_v23 = vadd.f32 %v763_v25, %v695_v19  ;;  %v310_v59 = vadd.f32 %v278_v34, %v210_v54 }
  0x31   :  { %v311_v63 = vadd.f32 %v279_v35, %v211_v20  ;;  %v580_v61 = vmul.f32 %v1888_v31, %v1646_v26  ;;  %v680_v25 = vmul.f32 %v2007_v55, %v1648_v27  ;;  %v681_v9 = vmul.f32 %v2012_v43, %v1648_v27 }
  0x32   :  { %v780_v10 = vmul.f32 %v2017_v41, %v1721_v58  ;;  %v894_v17 = vadd.f32 %v862_v4, %v794_v22  ;;  %v895_v6 = vadd.f32 %v863_v1, %v795_v23  ;;  %v411_v11 = vadd.f32 %v379_v39, %v310_v59 }
  0x33   :  { %v412_v14 = vadd.f32 %v380_v42, %v311_v63  ;;  %v781_v29 = vmul.f32 %v2032_v50, %v1721_v58  ;;  %v880_v28 = vmul.f32 %v1672_v36, %v2037_v51  ;;  %v881_v12 = vmul.f32 %v1672_v36, %v2042_v0 }
  0x34   :  { %v62_v32 = vmul.f32 %v1785_v37, %v1608_v15  ;;  %v1047_v34 = vld [vmem:[#allocation2 + $0x90] sm:$0xff]  ;;  %v1048_v35 = vld [vmem:[#allocation2 + $0x98] sm:$0xff]  ;;  %v933_v7 = vadd.f32 %v1839_v30, %v894_v17  ;;  %v934_v4 = vadd.f32 %v1839_v30, %v895_v6  ;;  %v511_v1 = vadd.f32 %v479_v44, %v411_v11  ;;  %v2083_v17 = vld [vmem:[%s2856_s0 + $0x60] sm:$0xff] }
  0x35   :  { %v512_v39 = vadd.f32 %v480_v47, %v412_v14  ;;  %v1512_v19 = vpack.c.bf16 %v1048_v35, %v1047_v34  ;;  %v63_v54 = vmul.f32 %v1790_v38, %v1608_v15  ;;  %v162_v20 = vmul.f32 %v1799_v45, %v1610_v16  ;;  %v2100_v14 = vld [vmem:[%s2856_s0 + $0x61] sm:$0xff] }
  0x36   :  { %v163_v42 = vmul.f32 %v1804_v46, %v1610_v16  ;;  %v965_v22 = vmax.f32 %v933_v7, 0.0  ;;  %v966_v37 = vmax.f32 %v934_v4, 0.0  ;;  %v611_v23 = vadd.f32 %v579_v48, %v511_v1  ;;  %v2115_v1 = vld [vmem:[%s2856_s0 + $0x62] sm:$0xff] }
  0x37   :  { %v612_v59 = vadd.f32 %v580_v61, %v512_v39  ;;  %1514 = vmatprep.subr.msk.bf16.mxu0 %vm1923_vm1, %v1512_v19  ;;  %v194_v63 = vadd.f32 %v162_v20, %v62_v32  ;;  %v262_v47 = vmul.f32 %v1813_v57, %v1615_v18  ;;  %v263_v38 = vmul.f32 %v1818_v60, %v1615_v18  ;;  %v2088_v57 = vld [vmem:[%s2856_s0 + $0x68] sm:$0xff]  ;;  %v1028_v60 = vld [vmem:[%s2858_s3] sm:$0xff] }
  0x38   :  { %v195_v44 = vadd.f32 %v163_v42, %v63_v54  ;;  %998 = vst.msk [vmem:[#allocation2 + $0x10] sm:$0xff] %vm995_vm0, %v965_v22  ;;  %999 = vst.msk [vmem:[#allocation2 + $0x18] sm:$0xff] %vm995_vm0, %v966_v37  ;;  %v712_v45 = vadd.f32 %v680_v25, %v611_v23  ;;  %v363_v48 = vmul.f32 %v1934_v62, %v1627_v21  ;;  %v2105_v32 = vld [vmem:[%s2856_s0 + $0x69] sm:$0xff]  ;;  %1504 = vmatprep.mubr.msk.f32.mxu0 %vm995_vm0, %v1028_v60 }
  0x39   :  { %v713_v46 = vadd.f32 %v681_v9, %v612_v59  ;;  %v364_v61 = vmul.f32 %v1944_v5, %v1627_v21  ;;  %v294_v25 = vadd.f32 %v262_v47, %v194_v63  ;;  %v463_v6 = vmul.f32 %v1951_v8, %v1639_v24  ;;  %v2120_v39 = vld [vmem:[%s2856_s0 + $0x6a] sm:$0xff] }
  0x3a   :  { %v295_v9 = vadd.f32 %v263_v38, %v195_v44  ;;  %v464_v11 = vmul.f32 %v1956_v40, %v1639_v24  ;;  %v812_v34 = vadd.f32 %v780_v10, %v712_v45  ;;  %v563_v7 = vmul.f32 %v1965_v49, %v1646_v26 }
  0x3b   :  { %v813_v35 = vadd.f32 %v781_v29, %v713_v46  ;;  %v564_v4 = vmul.f32 %v1970_v13, %v1646_v26  ;;  %v395_v19 = vadd.f32 %v363_v48, %v294_v25  ;;  %v664_v10 = vmul.f32 %v2083_v17, %v1648_v27 }
  0x3c   :  { %v396_v54 = vadd.f32 %v364_v61, %v295_v9  ;;  %v665_v29 = vmul.f32 %v2088_v57, %v1648_v27  ;;  %v912_v20 = vadd.f32 %v880_v28, %v812_v34  ;;  %v764_v22 = vmul.f32 %v2100_v14, %v1721_v58 }
  0x3d   :  { %v913_v42 = vadd.f32 %v881_v12, %v813_v35  ;;  %v765_v37 = vmul.f32 %v2105_v32, %v1721_v58  ;;  %v495_v23 = vadd.f32 %v463_v6, %v395_v19  ;;  %v864_v63 = vmul.f32 %v1672_v36, %v2115_v1 }
  0x3e   :  { %v496_v59 = vadd.f32 %v464_v11, %v396_v54  ;;  %v865_v44 = vmul.f32 %v1672_v36, %v2120_v39  ;;  %v951_v47 = vadd.f32 %v1839_v30, %v912_v20  ;;  %v80_v28 = vmul.f32 %v1859_v33, %v1608_v15  ;;  %v2166_v54 = vld [vmem:[%s2856_s0 + $0x140] sm:$0xff] }
  0x3f   :  { %v952_v38 = vadd.f32 %v1839_v30, %v913_v42  ;;  %v81_v12 = vmul.f32 %v1864_v56, %v1608_v15  ;;  %v1031_v45 = vld [vmem:[#allocation2 + $0x10] sm:$0xff]  ;;  %v1032_v46 = vld [vmem:[#allocation2 + $0x18] sm:$0xff]  ;;  %v595_v48 = vadd.f32 %v563_v7, %v495_v23  ;;  %v180_v60 = vmul.f32 %v1873_v2, %v1610_v16  ;;  %v2178_v23 = vld [vmem:[%s2856_s0 + $0x141] sm:$0xff] }
  0x40   :  { %v596_v61 = vadd.f32 %v564_v4, %v496_v59  ;;  %v181_v25 = vmul.f32 %v1878_v52, %v1610_v16  ;;  %v1515_v9 = vpack.c.bf16 %v1032_v46, %v1031_v45  ;;  %v983_v6 = vmax.f32 %v951_v47, 0.0  ;;  %v2149_v7 = vld [vmem:[%s2856_s0 + $0x138] sm:$0xff] }
  0x41   :  { %v984_v11 = vmax.f32 %v952_v38, 0.0  ;;  %v280_v34 = vmul.f32 %v1883_v53, %v1615_v18  ;;  %v696_v33 = vadd.f32 %v664_v10, %v595_v48  ;;  %v212_v19 = vadd.f32 %v180_v60, %v80_v28  ;;  %v2173_v42 = vld [vmem:[%s2856_s0 + $0x139] sm:$0xff]  ;;  %v2194_v28 = vld [vmem:[%s2856_s0 + $0x142] sm:$0xff] }
  0x42   :  { %v697_v35 = vadd.f32 %v665_v29, %v596_v61  ;;  %v213_v56 = vadd.f32 %v181_v25, %v81_v12  ;;  %1517 = vmatpush3.bf16.xpose.msk.msra.mxu0 %vm1923_vm1, %v1515_v9  ;;  %1016 = vst.msk [vmem:[#allocation2 + $0xa0] sm:$0xff] %vm995_vm0, %v983_v6  ;;  %v281_v2 = vmul.f32 %v1888_v31, %v1615_v18  ;;  %v2183_v59 = vld [vmem:[%s2856_s0 + $0x13a] sm:$0xff] }
  0x43   :  { %1017 = vst.msk [vmem:[#allocation2 + $0xa8] sm:$0xff] %vm995_vm0, %v984_v11  ;;  %v381_v52 = vmul.f32 %v2007_v55, %v1627_v21  ;;  %v382_v53 = vmul.f32 %v2012_v43, %v1627_v21  ;;  %v481_v4 = vmul.f32 %v2017_v41, %v1639_v24  ;;  %v796_v10 = vadd.f32 %v764_v22, %v696_v33 }
  0x44   :  { %v797_v29 = vadd.f32 %v765_v37, %v697_v35  ;;  %v312_v20 = vadd.f32 %v280_v34, %v212_v19  ;;  %v482_v31 = vmul.f32 %v2032_v50, %v1639_v24  ;;  %v313_v22 = vadd.f32 %v281_v2, %v213_v56 }
  0x45   :  { %v581_v37 = vmul.f32 %v2037_v51, %v1646_v26  ;;  %v582_v47 = vmul.f32 %v2042_v0, %v1646_v26  ;;  %v682_v38 = vmul.f32 %v2149_v7, %v1648_v27  ;;  %v896_v12 = vadd.f32 %v864_v63, %v796_v10 }
  0x46   :  { %v897_v45 = vadd.f32 %v865_v44, %v797_v29  ;;  %v413_v46 = vadd.f32 %v381_v52, %v312_v20  ;;  %v683_v48 = vmul.f32 %v2166_v54, %v1648_v27  ;;  %v414_v61 = vadd.f32 %v382_v53, %v313_v22 }
  0x47   :  { %v782_v60 = vmul.f32 %v2173_v42, %v1721_v58  ;;  %v783_v25 = vmul.f32 %v2178_v23, %v1721_v58  ;;  %v882_v9 = vmul.f32 %v1672_v36, %v2183_v59  ;;  %v935_v6 = vadd.f32 %v1839_v30, %v896_v12 }
  0x48   :  { %v936_v11 = vadd.f32 %v1839_v30, %v897_v45  ;;  %v513_v63 = vadd.f32 %v481_v4, %v413_v46  ;;  %v883_v44 = vmul.f32 %v1672_v36, %v2194_v28  ;;  %v514_v34 = vadd.f32 %v482_v31, %v414_v61  ;;  %v2243_v45 = vld [vmem:[%s2856_s0 + $0x79] sm:$0xff] }
  0x49   :  { %v64_v33 = vmul.f32 %v1934_v62, %v1608_v15  ;;  %v65_v35 = vmul.f32 %v1944_v5, %v1608_v15  ;;  %v164_v19 = vmul.f32 %v1951_v8, %v1610_v16  ;;  %v1049_v56 = vld [vmem:[#allocation2 + $0xa0] sm:$0xff]  ;;  %v967_v52 = vmax.f32 %v935_v6, 0.0 }
  0x4a   :  { %v1050_v2 = vld [vmem:[#allocation2 + $0xa8] sm:$0xff]  ;;  %v968_v53 = vmax.f32 %v936_v11, 0.0  ;;  %v613_v10 = vadd.f32 %v581_v37, %v513_v63  ;;  %v165_v4 = vmul.f32 %v1956_v40, %v1610_v16  ;;  %v614_v20 = vadd.f32 %v582_v47, %v514_v34  ;;  %v2227_v40 = vld [vmem:[%s2856_s0 + $0x78] sm:$0xff] }
  0x4b   :  { %v1518_v29 = vpack.c.bf16 %v1050_v2, %v1049_v56  ;;  %v196_v31 = vadd.f32 %v164_v19, %v64_v33  ;;  %v264_v62 = vmul.f32 %v1965_v49, %v1615_v18  ;;  %1000 = vst.msk [vmem:[#allocation2 + $0x20] sm:$0xff] %vm995_vm0, %v967_v52  ;;  %v265_v22 = vmul.f32 %v1970_v13, %v1615_v18  ;;  %v2238_v13 = vld [vmem:[%s2856_s0 + $0x80] sm:$0xff] }
  0x4c   :  { %1001 = vst.msk [vmem:[#allocation2 + $0x28] sm:$0xff] %vm995_vm0, %v968_v53  ;;  %v714_v5 = vadd.f32 %v682_v38, %v613_v10  ;;  %v197_v8 = vadd.f32 %v165_v4, %v65_v35  ;;  %v365_v37 = vmul.f32 %v2083_v17, %v1627_v21  ;;  %v715_v49 = vadd.f32 %v683_v48, %v614_v20  ;;  %v2252_v11 = vld [vmem:[%s2856_s0 + $0x81] sm:$0xff] }
  0x4d   :  { %1520 = vmatprep.subr.msk.bf16.mxu0 %vm1923_vm1, %v1518_v29  ;;  %v296_v47 = vadd.f32 %v264_v62, %v196_v31  ;;  %v366_v38 = vmul.f32 %v2088_v57, %v1627_v21  ;;  %v465_v12 = vmul.f32 %v2100_v14, %v1639_v24  ;;  %v466_v48 = vmul.f32 %v2105_v32, %v1639_v24  ;;  %v2257_v63 = vld [vmem:[%s2856_s0 + $0x7a] sm:$0xff]  ;;  %v2266_v19 = vld [vmem:[%s2856_s0 + $0x82] sm:$0xff] }
  0x4e   :  { %v814_v46 = vadd.f32 %v782_v60, %v714_v5  ;;  %v297_v61 = vadd.f32 %v265_v22, %v197_v8  ;;  %v565_v6 = vmul.f32 %v2115_v1, %v1646_v26  ;;  %v815_v34 = vadd.f32 %v783_v25, %v715_v49 }
  0x4f   :  { %v397_v33 = vadd.f32 %v365_v37, %v296_v47  ;;  %v566_v60 = vmul.f32 %v2120_v39, %v1646_v26  ;;  %v666_v35 = vmul.f32 %v2227_v40, %v1648_v27  ;;  %v667_v52 = vmul.f32 %v2238_v13, %v1648_v27 }
  0x50   :  { %v914_v56 = vadd.f32 %v882_v9, %v814_v46  ;;  %v398_v2 = vadd.f32 %v366_v38, %v297_v61  ;;  %v766_v25 = vmul.f32 %v2243_v45, %v1721_v58  ;;  %v915_v53 = vadd.f32 %v883_v44, %v815_v34 }
  0x51   :  { %v497_v10 = vadd.f32 %v465_v12, %v397_v33  ;;  %v767_v4 = vmul.f32 %v2252_v11, %v1721_v58  ;;  %v866_v29 = vmul.f32 %v1672_v36, %v2257_v63  ;;  %v867_v9 = vmul.f32 %v1672_v36, %v2266_v19 }
  0x52   :  { %v953_v20 = vadd.f32 %v1839_v30, %v914_v56  ;;  %v498_v31 = vadd.f32 %v466_v48, %v398_v2  ;;  %v82_v62 = vmul.f32 %v2007_v55, %v1608_v15  ;;  %v1033_v5 = vld [vmem:[#allocation2 + $0x20] sm:$0xff]  ;;  %v954_v44 = vadd.f32 %v1839_v30, %v915_v53  ;;  %v2315_v2 = vld [vmem:[%s2856_s0 + $0x151] sm:$0xff] }
  0x53   :  { %v1034_v8 = vld [vmem:[#allocation2 + $0x28] sm:$0xff]  ;;  %v597_v22 = vadd.f32 %v565_v6, %v497_v10  ;;  %v83_v37 = vmul.f32 %v2012_v43, %v1608_v15  ;;  %v182_v49 = vmul.f32 %v2017_v41, %v1610_v16  ;;  %v183_v46 = vmul.f32 %v2032_v50, %v1610_v16  ;;  %v2300_v50 = vld [vmem:[%s2856_s0 + $0x150] sm:$0xff] }
  0x54   :  { %v1521_v47 = vpack.c.bf16 %v1034_v8, %v1033_v5  ;;  %v985_v38 = vmax.f32 %v953_v20, 0.0  ;;  %v598_v12 = vadd.f32 %v566_v60, %v498_v31  ;;  %v986_v61 = vmax.f32 %v954_v44, 0.0  ;;  %v2324_v20 = vld [vmem:[%s2856_s0 + $0x159] sm:$0xff] }
  0x55   :  { %v698_v48 = vadd.f32 %v666_v35, %v597_v22  ;;  %v214_v55 = vadd.f32 %v182_v49, %v82_v62  ;;  %v282_v34 = vmul.f32 %v2037_v51, %v1615_v18  ;;  %v215_v6 = vadd.f32 %v183_v46, %v83_v37  ;;  %v2329_v31 = vld [vmem:[%s2856_s0 + $0x152] sm:$0xff]  ;;  %v2338_v44 = vld [vmem:[%s2856_s0 + $0x15a] sm:$0xff] }
  0x56   :  { %1523 = vmatpush3.bf16.xpose.msk.msra.mxu0 %vm1923_vm1, %v1521_v47  ;;  %1018 = vst.msk [vmem:[#allocation2 + $0xb0] sm:$0xff] %vm995_vm0, %v985_v38  ;;  %v699_v43 = vadd.f32 %v667_v52, %v598_v12  ;;  %v283_v41 = vmul.f32 %v2042_v0, %v1615_v18  ;;  %v383_v33 = vmul.f32 %v2149_v7, %v1627_v21  ;;  %1019 = vst.msk [vmem:[#allocation2 + $0xb8] sm:$0xff] %vm995_vm0, %v986_v61  ;;  %v2310_v0 = vld [vmem:[%s2856_s0 + $0x158] sm:$0xff] }
  0x57   :  { %v798_v51 = vadd.f32 %v766_v25, %v698_v48  ;;  %v314_v60 = vadd.f32 %v282_v34, %v214_v55  ;;  %v384_v35 = vmul.f32 %v2166_v54, %v1627_v21  ;;  %v483_v56 = vmul.f32 %v2173_v42, %v1639_v24 }
  0x58   :  { %v799_v52 = vadd.f32 %v767_v4, %v699_v43  ;;  %v315_v53 = vadd.f32 %v283_v41, %v215_v6  ;;  %v484_v25 = vmul.f32 %v2178_v23, %v1639_v24  ;;  %v583_v10 = vmul.f32 %v2183_v59, %v1646_v26 }
  0x59   :  { %v898_v62 = vadd.f32 %v866_v29, %v798_v51  ;;  %v415_v5 = vadd.f32 %v383_v33, %v314_v60  ;;  %v584_v4 = vmul.f32 %v2194_v28, %v1646_v26  ;;  %v684_v8 = vmul.f32 %v2300_v50, %v1648_v27 }
  0x5a   :  { %v899_v22 = vadd.f32 %v867_v9, %v799_v52  ;;  %v416_v37 = vadd.f32 %v384_v35, %v315_v53  ;;  %v685_v49 = vmul.f32 %v2310_v0, %v1648_v27  ;;  %v784_v29 = vmul.f32 %v2315_v2, %v1721_v58 }
  0x5b   :  { %v937_v47 = vadd.f32 %v1839_v30, %v898_v62  ;;  %v515_v38 = vadd.f32 %v483_v56, %v415_v5  ;;  %v785_v12 = vmul.f32 %v2324_v20, %v1721_v58  ;;  %v884_v46 = vmul.f32 %v1672_v36, %v2329_v31  ;;  %v2378_v5 = vld [vmem:[%s2856_s0 + $0x98] sm:$0xff] }
  0x5c   :  { %v938_v61 = vadd.f32 %v1839_v30, %v899_v22  ;;  %v516_v48 = vadd.f32 %v484_v25, %v416_v37  ;;  %v885_v9 = vmul.f32 %v1672_v36, %v2338_v44  ;;  %v66_v55 = vmul.f32 %v2083_v17, %v1608_v15  ;;  %v2389_v37 = vld [vmem:[%s2856_s0 + $0x91] sm:$0xff] }
  0x5d   :  { %v1051_v34 = vld [vmem:[#allocation2 + $0xb0] sm:$0xff]  ;;  %v969_v43 = vmax.f32 %v937_v47, 0.0  ;;  %v615_v6 = vadd.f32 %v583_v10, %v515_v38  ;;  %v67_v41 = vmul.f32 %v2088_v57, %v1608_v15  ;;  %v166_v33 = vmul.f32 %v2100_v14, %v1610_v16  ;;  %v1052_v51 = vld [vmem:[#allocation2 + $0xb8] sm:$0xff] }
  0x5e   :  { %v970_v60 = vmax.f32 %v938_v61, 0.0  ;;  %v616_v35 = vadd.f32 %v584_v4, %v516_v48  ;;  %v167_v56 = vmul.f32 %v2105_v32, %v1610_v16  ;;  %v266_v52 = vmul.f32 %v2115_v1, %v1615_v18  ;;  %v2373_v1 = vld [vmem:[%s2856_s0 + $0x90] sm:$0xff] }
  0x5f   :  { %v1524_v53 = vpack.c.bf16 %v1052_v51, %v1051_v34  ;;  %1002 = vst.msk [vmem:[#allocation2 + $0x30] sm:$0xff] %vm995_vm0, %v969_v43  ;;  %v716_v17 = vadd.f32 %v684_v8, %v615_v6  ;;  %v198_v25 = vadd.f32 %v166_v33, %v66_v55  ;;  %v267_v57 = vmul.f32 %v2120_v39, %v1615_v18  ;;  %v2403_v48 = vld [vmem:[%s2856_s0 + $0x92] sm:$0xff]  ;;  %v2408_v55 = vld [vmem:[%s2856_s0 + $0x9a] sm:$0xff] }
  0x60   :  { %1003 = vst.msk [vmem:[#allocation2 + $0x38] sm:$0xff] %vm995_vm0, %v970_v60  ;;  %v717_v14 = vadd.f32 %v685_v49, %v616_v35  ;;  %v199_v10 = vadd.f32 %v167_v56, %v67_v41  ;;  %v367_v62 = vmul.f32 %v2227_v40, %v1627_v21  ;;  %v368_v32 = vmul.f32 %v2238_v13, %v1627_v21  ;;  %v2394_v49 = vld [vmem:[%s2856_s0 + $0x99] sm:$0xff] }
  0x61   :  { %1526 = vmatprep.subr.msk.bf16.mxu0 %vm1923_vm1, %v1524_v53  ;;  %v816_v39 = vadd.f32 %v784_v29, %v716_v17  ;;  %v298_v4 = vadd.f32 %v266_v52, %v198_v25  ;;  %v467_v8 = vmul.f32 %v2243_v45, %v1639_v24  ;;  %v468_v22 = vmul.f32 %v2252_v11, %v1639_v24 }
  0x62   :  { %v817_v47 = vadd.f32 %v785_v12, %v717_v14  ;;  %v299_v38 = vadd.f32 %v267_v57, %v199_v10  ;;  %v567_v29 = vmul.f32 %v2257_v63, %v1646_v26  ;;  %v568_v61 = vmul.f32 %v2266_v19, %v1646_v26 }
  0x63   :  { %v916_v34 = vadd.f32 %v884_v46, %v816_v39  ;;  %v399_v43 = vadd.f32 %v367_v62, %v298_v4  ;;  %v668_v12 = vmul.f32 %v2373_v1, %v1648_v27  ;;  %v669_v6 = vmul.f32 %v2378_v5, %v1648_v27 }
  0x64   :  { %v917_v41 = vadd.f32 %v885_v9, %v817_v47  ;;  %v400_v33 = vadd.f32 %v368_v32, %v299_v38  ;;  %v768_v51 = vmul.f32 %v2389_v37, %v1721_v58  ;;  %v769_v60 = vmul.f32 %v2394_v49, %v1721_v58 }
  0x65   :  { %v955_v35 = vadd.f32 %v1839_v30, %v916_v34  ;;  %v499_v56 = vadd.f32 %v467_v8, %v399_v43  ;;  %v868_v46 = vmul.f32 %v1672_v36, %v2403_v48  ;;  %v869_v52 = vmul.f32 %v1672_v36, %v2408_v55 }
  0x66   :  { %v1035_v53 = vld [vmem:[#allocation2 + $0x30] sm:$0xff]  ;;  %v956_v17 = vadd.f32 %v1839_v30, %v917_v41  ;;  %v500_v9 = vadd.f32 %v468_v22, %v400_v33  ;;  %v84_v25 = vmul.f32 %v2149_v7, %v1608_v15  ;;  %v85_v57 = vmul.f32 %v2166_v54, %v1608_v15 }
  0x67   :  { %v1036_v14 = vld [vmem:[#allocation2 + $0x38] sm:$0xff]  ;;  %v987_v10 = vmax.f32 %v955_v35, 0.0  ;;  %v599_v62 = vadd.f32 %v567_v29, %v499_v56  ;;  %v184_v32 = vmul.f32 %v2173_v42, %v1610_v16  ;;  %v185_v39 = vmul.f32 %v2178_v23, %v1610_v16  ;;  %v2440_v42 = vld [vmem:[%s2856_s0 + $0x168] sm:$0xff] }
  0x68   :  { %v1527_v36 = vpack.c.bf16 %v1036_v14, %v1035_v53  ;;  %v988_v4 = vmax.f32 %v956_v17, 0.0  ;;  %v600_v8 = vadd.f32 %v568_v61, %v500_v9  ;;  %v284_v22 = vmul.f32 %v2183_v59, %v1615_v18  ;;  %v2454_v61 = vld [vmem:[%s2856_s0 + $0x170] sm:$0xff] }
  0x69   :  { %1020 = vst.msk [vmem:[#allocation2 + $0xc0] sm:$0xff] %vm995_vm0, %v987_v10  ;;  %v700_v7 = vadd.f32 %v668_v12, %v599_v62  ;;  %v216_v47 = vadd.f32 %v184_v32, %v84_v25  ;;  %v217_v54 = vadd.f32 %v185_v39, %v85_v57  ;;  %v285_v38 = vmul.f32 %v2194_v28, %v1615_v18  ;;  %v2461_v41 = vld [vmem:[%s2856_s0 + $0x169] sm:$0xff]  ;;  %v2466_v33 = vld [vmem:[%s2856_s0 + $0x171] sm:$0xff]  ;;  %v2493_v39 = vld [vmem:[%s2855_s1 + $0x8] ss:$0 sm:$0xff] }
  0x6a   :  { %1529 = vmatpush3.bf16.xpose.msk.msra.mxu0 %vm1923_vm1, %v1527_v36  ;;  %1021 = vst.msk [vmem:[#allocation2 + $0xc8] sm:$0xff] %vm995_vm0, %v988_v4  ;;  %v701_v23 = vadd.f32 %v669_v6, %v600_v8  ;;  %v385_v59 = vmul.f32 %v2300_v50, %v1627_v21  ;;  %v386_v29 = vmul.f32 %v2310_v0, %v1627_v21  ;;  %v2471_v35 = vld [vmem:[%s2856_s0 + $0x16a] sm:$0xff]  ;;  %v2482_v9 = vld [vmem:[%s2856_s0 + $0x172] sm:$0xff] }
  0x6b   :  { %v485_v28 = vmul.f32 %v2315_v2, %v1639_v24  ;;  %v800_v34 = vadd.f32 %v768_v51, %v700_v7  ;;  %v316_v43 = vadd.f32 %v284_v22, %v216_v47  ;;  %v317_v12 = vadd.f32 %v285_v38, %v217_v54 }
  0x6c   :  { %v486_v6 = vmul.f32 %v2324_v20, %v1639_v24  ;;  %v801_v51 = vadd.f32 %v769_v60, %v701_v23  ;;  %v585_v56 = vmul.f32 %v2329_v31, %v1646_v26  ;;  %v586_v53 = vmul.f32 %v2338_v44, %v1646_v26 }
  0x6d   :  { %v686_v17 = vmul.f32 %v2440_v42, %v1648_v27  ;;  %v900_v25 = vadd.f32 %v868_v46, %v800_v34  ;;  %v417_v57 = vadd.f32 %v385_v59, %v316_v43  ;;  %v418_v14 = vadd.f32 %v386_v29, %v317_v12 }
  0x6e   :  { %v687_v60 = vmul.f32 %v2454_v61, %v1648_v27  ;;  %v901_v10 = vadd.f32 %v869_v52, %v801_v51  ;;  %v786_v62 = vmul.f32 %v2461_v41, %v1721_v58  ;;  %v787_v32 = vmul.f32 %v2466_v33, %v1721_v58 }
  0x6f   :  { %v886_v46 = vmul.f32 %v2493_v39, %v2471_v35  ;;  %v939_v36 = vadd.f32 %v1839_v30, %v900_v25  ;;  %v517_v4 = vadd.f32 %v485_v28, %v417_v57  ;;  %v518_v8 = vadd.f32 %v486_v6, %v418_v14 }
  0x70   :  { %v887_v52 = vmul.f32 %v2493_v39, %v2482_v9  ;;  %v1053_v22 = vld [vmem:[#allocation2 + $0xc0] sm:$0xff]  ;;  %v940_v7 = vadd.f32 %v1839_v30, %v901_v10  ;;  %v68_v47 = vmul.f32 %v2227_v40, %v1608_v15  ;;  %v69_v54 = vmul.f32 %v2238_v13, %v1608_v15 }
  0x71   :  { %v168_v38 = vmul.f32 %v2243_v45, %v1610_v16  ;;  %v1054_v23 = vld [vmem:[#allocation2 + $0xc8] sm:$0xff]  ;;  %v971_v59 = vmax.f32 %v939_v36, 0.0  ;;  %v617_v29 = vadd.f32 %v585_v56, %v517_v4  ;;  %v618_v28 = vadd.f32 %v586_v53, %v518_v8  ;;  %v2543_v4 = vld [vmem:[%s2856_s0 + $0xb1] sm:$0xff] }
  0x72   :  { %v169_v34 = vmul.f32 %v2252_v11, %v1610_v16  ;;  %v1530_v43 = vpack.c.bf16 %v1054_v23, %v1053_v22  ;;  %v972_v12 = vmax.f32 %v940_v7, 0.0  ;;  %v268_v51 = vmul.f32 %v2257_v63, %v1615_v18  ;;  %v2517_v56 = vld [vmem:[%s2856_s0 + $0xa8] sm:$0xff] }
  0x73   :  { %v200_v6 = vadd.f32 %v168_v38, %v68_v47  ;;  %1004 = vst.msk [vmem:[#allocation2 + $0x40] sm:$0xff] %vm995_vm0, %v971_v59  ;;  %v718_v40 = vadd.f32 %v686_v17, %v617_v29  ;;  %v719_v13 = vadd.f32 %v687_v60, %v618_v28  ;;  %v269_v45 = vmul.f32 %v2266_v19, %v1615_v18  ;;  %v2531_v17 = vld [vmem:[%s2856_s0 + $0xb0] sm:$0xff] }
  0x74   :  { %v201_v25 = vadd.f32 %v169_v34, %v69_v54  ;;  %1532 = vmatprep.subr.msk.bf16.mxu0 %vm1923_vm1, %v1530_v43  ;;  %1005 = vst.msk [vmem:[#allocation2 + $0x48] sm:$0xff] %vm995_vm0, %v972_v12  ;;  %v369_v63 = vmul.f32 %v2373_v1, %v1627_v21  ;;  %v370_v53 = vmul.f32 %v2378_v5, %v1627_v21  ;;  %v2538_v36 = vld [vmem:[%s2856_s0 + $0xa9] sm:$0xff]  ;;  %v2559_v47 = vld [vmem:[%s2856_s0 + $0xb2] sm:$0xff] }
  0x75   :  { %v300_v11 = vadd.f32 %v268_v51, %v200_v6  ;;  %v469_v19 = vmul.f32 %v2389_v37, %v1639_v24  ;;  %v818_v57 = vadd.f32 %v786_v62, %v718_v40  ;;  %v819_v14 = vadd.f32 %v787_v32, %v719_v13  ;;  %v2548_v8 = vld [vmem:[%s2856_s0 + $0xaa] sm:$0xff] }
  0x76   :  { %v301_v60 = vadd.f32 %v269_v45, %v201_v25  ;;  %v470_v10 = vmul.f32 %v2394_v49, %v1639_v24  ;;  %v569_v32 = vmul.f32 %v2403_v48, %v1646_v26  ;;  %v570_v22 = vmul.f32 %v2408_v55, %v1646_v26 }
  0x77   :  { %v401_v62 = vadd.f32 %v369_v63, %v300_v11  ;;  %v670_v7 = vmul.f32 %v2517_v56, %v1648_v27  ;;  %v918_v54 = vadd.f32 %v886_v46, %v818_v57  ;;  %v919_v38 = vadd.f32 %v887_v52, %v819_v14 }
  0x78   :  { %v402_v23 = vadd.f32 %v370_v53, %v301_v60  ;;  %v671_v59 = vmul.f32 %v2531_v17, %v1648_v27  ;;  %v770_v28 = vmul.f32 %v2538_v36, %v1721_v58  ;;  %v771_v34 = vmul.f32 %v2543_v4, %v1721_v58 }
  0x79   :  { %v501_v29 = vadd.f32 %v469_v19, %v401_v62  ;;  %v870_v43 = vmul.f32 %v2493_v39, %v2548_v8  ;;  %v957_v12 = vadd.f32 %v1839_v30, %v918_v54  ;;  %v958_v6 = vadd.f32 %v1839_v30, %v919_v38  ;;  %v2608_v54 = vld [vmem:[%s2856_s0 + $0x181] sm:$0xff] }
  0x7a   :  { %v502_v46 = vadd.f32 %v470_v10, %v402_v23  ;;  %v871_v52 = vmul.f32 %v2493_v39, %v2559_v47  ;;  %v1037_v51 = vld [vmem:[#allocation2 + $0x40] sm:$0xff]  ;;  %v86_v13 = vmul.f32 %v2300_v50, %v1608_v15  ;;  %v87_v25 = vmul.f32 %v2310_v0, %v1608_v15 }
  0x7b   :  { %v601_v40 = vadd.f32 %v569_v32, %v501_v29  ;;  %v186_v45 = vmul.f32 %v2315_v2, %v1610_v16  ;;  %v1038_v11 = vld [vmem:[#allocation2 + $0x48] sm:$0xff]  ;;  %v989_v63 = vmax.f32 %v957_v12, 0.0  ;;  %v990_v53 = vmax.f32 %v958_v6, 0.0 }
  0x7c   :  { %v602_v19 = vadd.f32 %v570_v22, %v502_v46  ;;  %v187_v30 = vmul.f32 %v2324_v20, %v1610_v16  ;;  %v1533_v57 = vpack.c.bf16 %v1038_v11, %v1037_v51  ;;  %v286_v10 = vmul.f32 %v2329_v31, %v1615_v18  ;;  %v2592_v20 = vld [vmem:[%s2856_s0 + $0x180] sm:$0xff] }
  0x7d   :  { %v702_v14 = vadd.f32 %v670_v7, %v601_v40  ;;  %v218_v60 = vadd.f32 %v186_v45, %v86_v13  ;;  %1022 = vst.msk [vmem:[#allocation2 + $0xd0] sm:$0xff] %vm995_vm0, %v989_v63  ;;  %1023 = vst.msk [vmem:[#allocation2 + $0xd8] sm:$0xff] %vm995_vm0, %v990_v53  ;;  %v287_v2 = vmul.f32 %v2338_v44, %v1615_v18  ;;  %v2603_v44 = vld [vmem:[%s2856_s0 + $0x188] sm:$0xff]  ;;  %v2640_v11 = vld [vmem:[%s2857_s2] ss:$0 sm:$0xff] }
  0x7e   :  { %v703_v50 = vadd.f32 %v671_v59, %v602_v19  ;;  %v219_v0 = vadd.f32 %v187_v30, %v87_v25  ;;  %v387_v62 = vmul.f32 %v2440_v42, %v1627_v21  ;;  %1535 = vmatpush3.bf16.xpose.msk.msra.mxu0 %vm1923_vm1, %v1533_v57  ;;  %v388_v22 = vmul.f32 %v2454_v61, %v1627_v21  ;;  %v2622_v12 = vld [vmem:[%s2856_s0 + $0x182] sm:$0xff]  ;;  %v2631_v40 = vld [vmem:[%s2856_s0 + $0x18a] sm:$0xff] }
  0x7f   :  { %v802_v31 = vadd.f32 %v770_v28, %v702_v14  ;;  %v318_v32 = vadd.f32 %v286_v10, %v218_v60  ;;  %v487_v7 = vmul.f32 %v2461_v41, %v1639_v24  ;;  %v488_v59 = vmul.f32 %v2466_v33, %v1639_v24  ;;  %v2617_v28 = vld [vmem:[%s2856_s0 + $0x189] sm:$0xff] }
  0x80   :  { %v803_v38 = vadd.f32 %v771_v34, %v703_v50  ;;  %v319_v23 = vadd.f32 %v287_v2, %v219_v0  ;;  %v587_v29 = vmul.f32 %v2471_v35, %v1646_v26  ;;  %v588_v34 = vmul.f32 %v2482_v9, %v1646_v26 }
  0x81   :  { %v902_v6 = vadd.f32 %v870_v43, %v802_v31  ;;  %v419_v46 = vadd.f32 %v387_v62, %v318_v32  ;;  %v688_v51 = vmul.f32 %v2592_v20, %v1648_v27  ;;  %v689_v45 = vmul.f32 %v2603_v44, %v1648_v27 }
  0x82   :  { %v903_v13 = vadd.f32 %v871_v52, %v803_v38  ;;  %v420_v25 = vadd.f32 %v388_v22, %v319_v23  ;;  %v788_v43 = vmul.f32 %v2608_v54, %v1721_v58  ;;  %v789_v19 = vmul.f32 %v2617_v28, %v1721_v58 }
  0x83   :  { %v941_v63 = vadd.f32 %v2640_v11, %v902_v6  ;;  %v519_v53 = vadd.f32 %v487_v7, %v419_v46  ;;  %v888_v52 = vmul.f32 %v2493_v39, %v2622_v12  ;;  %v889_v14 = vmul.f32 %v2493_v39, %v2631_v40 }
  0x84   :  { %v942_v30 = vadd.f32 %v2640_v11, %v903_v13  ;;  %v520_v57 = vadd.f32 %v488_v59, %v420_v25  ;;  %v70_v60 = vmul.f32 %v2373_v1, %v1608_v15  ;;  %v1055_v10 = vld [vmem:[#allocation2 + $0xd0] sm:$0xff]  ;;  %v1056_v50 = vld [vmem:[#allocation2 + $0xd8] sm:$0xff]  ;;  %v71_v62 = vmul.f32 %v2378_v5, %v1608_v15  ;;  %v2687_v25 = vld [vmem:[%s2856_s0 + $0xc1] sm:$0xff] }
  0x85   :  { %v973_v0 = vmax.f32 %v941_v63, 0.0  ;;  %v619_v2 = vadd.f32 %v587_v29, %v519_v53  ;;  %v170_v31 = vmul.f32 %v2389_v37, %v1610_v16  ;;  %v1536_v32 = vpack.c.bf16 %v1056_v50, %v1055_v10 }
  0x86   :  { %v974_v22 = vmax.f32 %v942_v30, 0.0  ;;  %v620_v7 = vadd.f32 %v588_v34, %v520_v57  ;;  %v171_v38 = vmul.f32 %v2394_v49, %v1610_v16  ;;  %v270_v59 = vmul.f32 %v2403_v48, %v1615_v18  ;;  %v2673_v48 = vld [vmem:[%s2856_s0 + $0xc0] sm:$0xff] }
  0x87   :  { %1006 = vst.msk [vmem:[#allocation2 + $0x50] sm:$0xff] %vm995_vm0, %v973_v0  ;;  %v720_v23 = vadd.f32 %v688_v51, %v619_v2  ;;  %v202_v1 = vadd.f32 %v170_v31, %v70_v60  ;;  %v271_v29 = vmul.f32 %v2408_v55, %v1615_v18  ;;  %1538 = vmatprep.subr.msk.bf16.mxu0 %vm1923_vm1, %v1536_v32  ;;  %v2678_v55 = vld [vmem:[%s2856_s0 + $0xc8] sm:$0xff] }
  0x88   :  { %1007 = vst.msk [vmem:[#allocation2 + $0x58] sm:$0xff] %vm995_vm0, %v974_v22  ;;  %v721_v5 = vadd.f32 %v689_v45, %v620_v7  ;;  %v203_v37 = vadd.f32 %v171_v38, %v71_v62  ;;  %v371_v49 = vmul.f32 %v2517_v56, %v1627_v21  ;;  %v372_v6 = vmul.f32 %v2531_v17, %v1627_v21  ;;  %v2692_v45 = vld [vmem:[%s2856_s0 + $0xc9] sm:$0xff] }
  0x89   :  { %v820_v46 = vadd.f32 %v788_v43, %v720_v23  ;;  %v302_v34 = vadd.f32 %v270_v59, %v202_v1  ;;  %v471_v51 = vmul.f32 %v2538_v36, %v1639_v24  ;;  %v472_v13 = vmul.f32 %v2543_v4, %v1639_v24  ;;  %v2701_v57 = vld [vmem:[%s2856_s0 + $0xc2] sm:$0xff]  ;;  %v2706_v60 = vld [vmem:[%s2856_s0 + $0xca] sm:$0xff] }
  0x8a   :  { %v821_v63 = vadd.f32 %v789_v19, %v721_v5  ;;  %v303_v53 = vadd.f32 %v271_v29, %v203_v37  ;;  %v571_v43 = vmul.f32 %v2548_v8, %v1646_v26  ;;  %v572_v30 = vmul.f32 %v2559_v47, %v1646_v26 }
  0x8b   :  { %v920_v10 = vadd.f32 %v888_v52, %v820_v46  ;;  %v403_v50 = vadd.f32 %v371_v49, %v302_v34  ;;  %v672_v19 = vmul.f32 %v2673_v48, %v1648_v27  ;;  %v673_v0 = vmul.f32 %v2678_v55, %v1648_v27 }
  0x8c   :  { %v921_v2 = vadd.f32 %v889_v14, %v821_v63  ;;  %v404_v62 = vadd.f32 %v372_v6, %v303_v53  ;;  %v772_v31 = vmul.f32 %v2687_v25, %v1721_v58  ;;  %v773_v32 = vmul.f32 %v2692_v45, %v1721_v58 }
  0x8d   :  { %v959_v22 = vadd.f32 %v2640_v11, %v920_v10  ;;  %v503_v7 = vadd.f32 %v471_v51, %v403_v50  ;;  %v872_v52 = vmul.f32 %v2493_v39, %v2701_v57  ;;  %v873_v38 = vmul.f32 %v2493_v39, %v2706_v60 }
  0x8e   :  { %v1039_v23 = vld [vmem:[#allocation2 + $0x50] sm:$0xff]  ;;  %v960_v1 = vadd.f32 %v2640_v11, %v921_v2  ;;  %v504_v14 = vadd.f32 %v472_v13, %v404_v62  ;;  %v88_v59 = vmul.f32 %v2440_v42, %v1608_v15  ;;  %v89_v29 = vmul.f32 %v2454_v61, %v1608_v15 }
  0x8f   :  { %v1040_v5 = vld [vmem:[#allocation2 + $0x58] sm:$0xff]  ;;  %v991_v37 = vmax.f32 %v959_v22, 0.0  ;;  %v603_v49 = vadd.f32 %v571_v43, %v503_v7  ;;  %v188_v6 = vmul.f32 %v2461_v41, %v1610_v16  ;;  %v189_v46 = vmul.f32 %v2466_v33, %v1610_v16  ;;  %v1436_v7 = vld [vmem:[%s2856_s0 + $0x1a2] sm:$0xff] }
  0x90   :  { %v1539_v34 = vpack.c.bf16 %v1040_v5, %v1039_v23  ;;  %v992_v51 = vmax.f32 %v960_v1, 0.0  ;;  %v604_v63 = vadd.f32 %v572_v30, %v504_v14  ;;  %v288_v13 = vmul.f32 %v2471_v35, %v1615_v18  ;;  %v1371_v41 = vld [vmem:[%s2856_s0 + $0x198] sm:$0xff] }
  0x91   :  { %1024 = vst.msk [vmem:[#allocation2 + $0xe0] sm:$0xff] %vm995_vm0, %v991_v37  ;;  %v704_v42 = vadd.f32 %v672_v19, %v603_v49  ;;  %v220_v53 = vadd.f32 %v188_v6, %v88_v59  ;;  %v221_v61 = vadd.f32 %v189_v46, %v89_v29  ;;  %v289_v43 = vmul.f32 %v2482_v9, %v1615_v18  ;;  %v1372_v9 = vld [vmem:[%s2856_s0 + $0x1a0] sm:$0xff] }
  0x92   :  { %1541 = vmatpush3.bf16.xpose.msk.msra.mxu0 %vm1923_vm1, %v1539_v34  ;;  %1025 = vst.msk [vmem:[#allocation2 + $0xe8] sm:$0xff] %vm995_vm0, %v992_v51  ;;  %v705_v33 = vadd.f32 %v673_v0, %v604_v63  ;;  %v389_v35 = vmul.f32 %v2592_v20, %v1627_v21  ;;  %v390_v30 = vmul.f32 %v2603_v44, %v1627_v21  ;;  %v1403_v20 = vld [vmem:[%s2856_s0 + $0x199] sm:$0xff]  ;;  %v1404_v44 = vld [vmem:[%s2856_s0 + $0x1a1] sm:$0xff] }
  0x93   :  { %v489_v10 = vmul.f32 %v2608_v54, %v1639_v24  ;;  %v804_v50 = vadd.f32 %v772_v31, %v704_v42  ;;  %v320_v19 = vadd.f32 %v288_v13, %v220_v53  ;;  %v321_v2 = vadd.f32 %v289_v43, %v221_v61  ;;  %v1435_v54 = vld [vmem:[%s2856_s0 + $0x19a] sm:$0xff] }
  0x94   :  { %v490_v62 = vmul.f32 %v2617_v28, %v1639_v24  ;;  %v805_v0 = vadd.f32 %v773_v32, %v705_v33  ;;  %v589_v31 = vmul.f32 %v2622_v12, %v1646_v26  ;;  %v590_v22 = vmul.f32 %v2631_v40, %v1646_v26 }
  0x95   :  { %v690_v28 = vmul.f32 %v1371_v41, %v1648_v27  ;;  %v904_v23 = vadd.f32 %v872_v52, %v804_v50  ;;  %v421_v1 = vadd.f32 %v389_v35, %v320_v19  ;;  %v422_v14 = vadd.f32 %v390_v30, %v321_v2 }
  0x96   :  { %v691_v59 = vmul.f32 %v1372_v9, %v1648_v27  ;;  %v905_v29 = vadd.f32 %v873_v38, %v805_v0  ;;  %v790_v32 = vmul.f32 %v1403_v20, %v1721_v58  ;;  %v791_v5 = vmul.f32 %v1404_v44, %v1721_v58 }
  0x97   :  { %v890_v12 = vmul.f32 %v2493_v39, %v1435_v54  ;;  %v943_v40 = vadd.f32 %v2640_v11, %v904_v23  ;;  %v521_v37 = vadd.f32 %v489_v10, %v421_v1  ;;  %v522_v49 = vadd.f32 %v490_v62, %v422_v14  ;;  %v1420_v23 = vld [vmem:[%s2856_s0 + $0xe2] sm:$0xff] }
  0x98   :  { %v891_v6 = vmul.f32 %v2493_v39, %v1436_v7  ;;  %v1057_v46 = vld [vmem:[#allocation2 + $0xe0] sm:$0xff]  ;;  %v944_v52 = vadd.f32 %v2640_v11, %v905_v29  ;;  %v72_v34 = vmul.f32 %v2517_v56, %v1608_v15  ;;  %v73_v38 = vmul.f32 %v2531_v17, %v1608_v15 }
  0x99   :  { %v172_v51 = vmul.f32 %v2538_v36, %v1610_v16  ;;  %v1058_v63 = vld [vmem:[#allocation2 + $0xe8] sm:$0xff]  ;;  %v975_v13 = vmax.f32 %v943_v40, 0.0  ;;  %v621_v42 = vadd.f32 %v589_v31, %v521_v37  ;;  %v622_v53 = vadd.f32 %v590_v22, %v522_v49 }
  0x9a   :  { %v173_v61 = vmul.f32 %v2543_v4, %v1610_v16  ;;  %v1542_v43 = vpack.c.bf16 %v1058_v63, %v1057_v46  ;;  %v976_v41 = vmax.f32 %v944_v52, 0.0  ;;  %v272_v35 = vmul.f32 %v2548_v8, %v1615_v18 }
  0x9b   :  { %v204_v33 = vadd.f32 %v172_v51, %v72_v34  ;;  %1008 = vst.msk [vmem:[#allocation2 + $0x60] sm:$0xff] %vm995_vm0, %v975_v13  ;;  %v722_v56 = vadd.f32 %v690_v28, %v621_v42  ;;  %v723_v15 = vadd.f32 %v691_v59, %v622_v53  ;;  %v273_v36 = vmul.f32 %v2559_v47, %v1615_v18  ;;  %v1355_v47 = vld [vmem:[%s2856_s0 + $0xd8] sm:$0xff] }
  0x9c   :  { %v205_v17 = vadd.f32 %v173_v61, %v73_v38  ;;  %1544 = vmatprep.subr.msk.bf16.mxu0 %vm1923_vm1, %v1542_v43  ;;  %1009 = vst.msk [vmem:[#allocation2 + $0x68] sm:$0xff] %vm995_vm0, %v976_v41  ;;  %v373_v4 = vmul.f32 %v2673_v48, %v1627_v21  ;;  %v374_v8 = vmul.f32 %v2678_v55, %v1627_v21  ;;  %v1356_v21 = vld [vmem:[%s2856_s0 + $0xe0] sm:$0xff] }
  0x9d   :  { %v304_v16 = vadd.f32 %v272_v35, %v204_v33  ;;  %v473_v30 = vmul.f32 %v2687_v25, %v1639_v24  ;;  %v822_v10 = vadd.f32 %v790_v32, %v722_v56  ;;  %v823_v9 = vadd.f32 %v791_v5, %v723_v15 }
  0x9e   :  { %v305_v50 = vadd.f32 %v273_v36, %v205_v17  ;;  %v474_v18 = vmul.f32 %v2692_v45, %v1639_v24  ;;  %v573_v48 = vmul.f32 %v2701_v57, %v1646_v26  ;;  %v574_v62 = vmul.f32 %v2706_v60, %v1646_v26  ;;  %v1387_v24 = vld [vmem:[%s2856_s0 + $0xd9] sm:$0xff]  ;;  %v1388_v57 = vld [vmem:[%s2856_s0 + $0xe1] sm:$0xff] }
  0x9f   :  { %v405_v19 = vadd.f32 %v373_v4, %v304_v16  ;;  %v922_v55 = vadd.f32 %v890_v12, %v822_v10  ;;  %v923_v25 = vadd.f32 %v891_v6, %v823_v9  ;;  %v674_v20 = vmul.f32 %v1355_v47, %v1648_v27  ;;  %v1419_v26 = vld [vmem:[%s2856_s0 + $0xda] sm:$0xff] }
  0xa0   :  { %v406_v2 = vadd.f32 %v374_v8, %v305_v50  ;;  %v675_v31 = vmul.f32 %v1356_v21, %v1648_v27  ;;  %v1061_v60 = vld [vmem:[%s2859_s4] sm:$0xff]  ;;  %v774_v7 = vmul.f32 %v1387_v24, %v1721_v58  ;;  %v775_v29 = vmul.f32 %v1388_v57, %v1721_v58 }
  0xa1   :  { %v505_v45 = vadd.f32 %v473_v30, %v405_v19  ;;  %v961_v44 = vadd.f32 %v2640_v11, %v922_v55  ;;  %v962_v54 = vadd.f32 %v2640_v11, %v923_v25  ;;  %v1559_v32 = vmov 0  }
  0xa2   :  { %v506_v0 = vadd.f32 %v474_v18, %v406_v2  ;;  %v1041_v22 = vld [vmem:[#allocation2 + $0x60] sm:$0xff]  ;;  %1555 = vset.pattern.permute.xlu0 %v1559_v32  ;;  %v874_v40 = vmul.f32 %v2493_v39, %v1419_v26  ;;  %v875_v49 = vmul.f32 %v2493_v39, %v1420_v23 }
  0xa3   :  { %v605_v28 = vadd.f32 %v573_v48, %v505_v45  ;;  %v1042_v1 = vld [vmem:[#allocation2 + $0x68] sm:$0xff]  ;;  %v993_v14 = vmax.f32 %v961_v44, 0.0  ;;  %v994_v59 = vmax.f32 %v962_v54, 0.0  ;;  %1064 = vperm.xlu0 %1555, %v1061_v60  }
  0xa4   :  { %v606_v27 = vadd.f32 %v574_v62, %v506_v0  ;;  %v1545_v5 = vpack.c.bf16 %v1042_v1, %v1041_v22 }
  0xa5   :  { %v706_v12 = vadd.f32 %v674_v20, %v605_v28  ;;  %1026 = vst.msk [vmem:[#allocation2 + $0xf0] sm:$0xff] %vm995_vm0, %v993_v14  ;;  %1027 = vst.msk [vmem:[#allocation2 + $0xf8] sm:$0xff] %vm995_vm0, %v994_v59 }
  0xa6   :  { %v707_v37 = vadd.f32 %v675_v31, %v606_v27  ;;  %1547 = vmatpush3.bf16.xpose.msk.msra.mxu0 %vm1923_vm1, %v1545_v5 }
  0xa7   :  { %v806_v6 = vadd.f32 %v774_v7, %v706_v12 }
  0xa8   :  { %v807_v46 = vadd.f32 %v775_v29, %v707_v37 }
  0xa9   :  { %v906_v58 = vadd.f32 %v874_v40, %v806_v6 }
  0xaa   :  { %v907_v52 = vadd.f32 %v875_v49, %v807_v46 }
  0xab   :  { %v945_v34 = vadd.f32 %v2640_v11, %v906_v58 }
  0xac   :  { %v946_v38 = vadd.f32 %v2640_v11, %v907_v52  ;;  %v1059_v51 = vld [vmem:[#allocation2 + $0xf0] sm:$0xff]  ;;  %v1060_v63 = vld [vmem:[#allocation2 + $0xf8] sm:$0xff]  ;;  %v1558_v11 = vld [vmem:[%s2858_s3] sm:$0xff] }
  0xad   :  { %v977_v13 = vmax.f32 %v945_v34, 0.0  ;;  %v1548_v42 = vpack.c.bf16 %v1060_v63, %v1059_v51 }
  0xae   :  { %v978_v53 = vmax.f32 %v946_v38, 0.0 }
  0xaf   :  { %1010 = vst.msk [vmem:[#allocation2 + $0x70] sm:$0xff] %vm995_vm0, %v977_v13  ;;  %1550 = vmatprep.subr.msk.bf16.mxu0 %vm1923_vm1, %v1548_v42 }
  0xb0   :  { %1011 = vst.msk [vmem:[#allocation2 + $0x78] sm:$0xff] %vm995_vm0, %v978_v53 }
  0xb6   :  { %v1043_v39 = vld [vmem:[#allocation2 + $0x70] sm:$0xff] }
  0xb7   :  { %v1044_v61 = vld [vmem:[#allocation2 + $0x78] sm:$0xff] }
  0xb8   :  { %v1551_v43 = vpack.c.bf16 %v1044_v61, %v1043_v39 }
  0xba   :  { %1553 = vmatpush3.bf16.xpose.msk.msra.mxu0 %vm1923_vm1, %v1551_v43 }
  0xc1   :  { %1505 = vmatmul.mubr.msk.f32.vlgmr.msra.gmra.mrb[0].mxu0 %vm995_vm0, %v1558_v11 }
 0x122   :  { %v1065_v41 = vpop.permute.xlu0 %1064 }
 0x194   :  { %v1232_v33 = vpop.f32.mrb[0].mxu0 }
 0x195   :  { %v1233_v35 = vadd.f32 %v1232_v33, %v1065_v41  ;;  %v1234_v56 = vpop.f32.mrb[1].mxu0 }
 0x196   :  { %v1235_v15 = vadd.f32 %v1234_v56, %v1065_v41 }
 0x197   :  { %v1237_v17 = vmax.f32 %v1233_v35, 0.0 }
 0x198   :  { %v1238_v36 = vmax.f32 %v1235_v15, 0.0 }
 0x199   :  { %1239 = vst [vmem:[%s2860_s5] sm:$0xff] %v1237_v17 }
 0x19a   :  { %1240 = vst [vmem:[%s2860_s5 + $0x8] sm:$0xff] %v1238_v36 }

</bundles_post_ra>
